<compile_context>
chip_gen: v7x
topology: tpu7x:2x2x1
jax: 0.10.0
libtpu: 0.0.40
codegen_flags: <defaults>
</compile_context>

<pallas_src>
import functools

import jax
import jax.numpy as jnp
from jax.experimental import pallas as pl
from jax.experimental.pallas import tpu as pltpu


# ---------------------------------------------------------------------------
# small helpers
# ---------------------------------------------------------------------------
def _round_up(x, m):
    return ((x + m - 1) // m) * m


def _win(off, size, stride):
    """Static window along one spatial dim (stride handled at trace time)."""
    if stride == 1:
        return slice(off, off + size)
    return pl.ds(off, size, stride=stride)   # only traced when stride > 1


def _l2_normalize(v, eps=1e-12):
    return v / jnp.maximum(jnp.linalg.norm(v), eps)


def spectral_norm_stats(weight, u, eps=1e-12):
    """One power iteration (PyTorch nn.utils.spectral_norm, dim=0, training mode).

    Returns (1/sigma, u_new).  Tiny reduction -> plain-JAX parameter setup.
    """
    oc = weight.shape[0]
    w_mat = weight.reshape(oc, -1)                    # [OC, IC*KH*KW]
    v = _l2_normalize(w_mat.T @ u, eps)
    u_new = _l2_normalize(w_mat @ v, eps)
    sigma = jnp.dot(u_new, w_mat @ v)
    return 1.0 / sigma, u_new


# ---------------------------------------------------------------------------
# Pallas kernel: direct conv (tap loop) + bias + LeakyReLU(0.2), one image/step
# ---------------------------------------------------------------------------
def _direct_conv_kernel(x_ref, w_ref, b_ref, o_ref, *,
                        KH, KW, OH, OW, sh, sw, dh, dw):
    """
    x_ref: (1, Hp, Wp, ICP)   f32   zero-padded NHWC image (one image per grid step)
    w_ref: (KH*KW, ICP, OCP)  bf16  per-tap weights, 1/sigma already folded in
    b_ref: (1, OCP)           f32   bias (zero-padded to OCP lanes)
    o_ref: (1, OH*OW, OCP)    f32   activated conv output, channels-last, lane-dense
    """
    ocp = o_ref.shape[-1]
    acc = jnp.zeros((OH * OW, ocp), jnp.float32)

    # Unrolled loop over the KH*KW filter taps: each tap is a shifted spatial
    # window of the halo'd input contracted against a (ICP, OCP) weight slab.
    for kh in range(KH):
        for kw in range(KW):
            patch = x_ref[0, _win(kh * dh, OH, sh), _win(kw * dw, OW, sw), :]
            patch = patch.reshape(OH * OW, patch.shape[-1])          # (OH*OW, ICP) f32
            patch = patch.astype(jnp.bfloat16)                       # bf16 MXU operand
            acc = acc + jnp.dot(patch, w_ref[kh * KW + kw],
                                preferred_element_type=jnp.float32)  # f32 accumulate

    acc = acc + b_ref[...]                                           # f32 epilogue
    o_ref[0] = jnp.where(acc >= 0.0, acc, 0.2 * acc).astype(o_ref.dtype)


# ---------------------------------------------------------------------------
# Wrapper: NCHW in -> (spectral-norm scale, NHWC pad) -> Pallas conv -> NCHW out
# ---------------------------------------------------------------------------
def spectral_norm_conv2d(x, weight, bias, u, *, stride=1, padding=1, dilation=1,
                         channels_last_out=False):
    """Forward of SpectralNormConv2d.  Returns (output, u_new)."""
    N, IC, H, W = x.shape
    OC, _, KH, KW = weight.shape
    sh, sw = (stride, stride) if isinstance(stride, int) else tuple(stride)
    ph, pw = (padding, padding) if isinstance(padding, int) else tuple(padding)
    dh, dw = (dilation, dilation) if isinstance(dilation, int) else tuple(dilation)

    OH = (H + 2 * ph - dh * (KH - 1) - 1) // sh + 1
    OW = (W + 2 * pw - dw * (KW - 1) - 1) // sw + 1
    Hp, Wp = H + 2 * ph, W + 2 * pw

    ICP = _round_up(IC, 8)      # aligned contraction dim
    OCP = _round_up(OC, 128)    # lane-dense output / MXU N dim

    # --- spectral norm: tiny f32 power iteration; 1/sigma folded into the single
    #     bf16 cast of the weight below (no extra pass over a rescaled weight).
    inv_sigma, u_new = spectral_norm_stats(weight, u)

    # --- weight -> per-tap (KH*KW, ICP, OCP) bf16 slabs
    w_taps = jnp.transpose(weight, (2, 3, 1, 0))                  # (KH, KW, IC, OC)
    w_taps = (w_taps * inv_sigma).astype(jnp.bfloat16)            # scale + cast, once
    w_taps = jnp.pad(w_taps, ((0, 0), (0, 0), (0, ICP - IC), (0, OCP - OC)))
    w_taps = w_taps.reshape(KH * KW, ICP, OCP)

    b2 = jnp.pad(bias.astype(jnp.float32), (0, OCP - OC)).reshape(1, OCP)

    # --- input: NCHW -> zero-padded NHWC (one pass over x, NO materialized im2col)
    xp = jnp.transpose(x, (0, 2, 3, 1)).astype(jnp.float32)
    xp = jnp.pad(xp, ((0, 0), (ph, ph), (pw, pw), (0, ICP - IC)))

    kernel = functools.partial(_direct_conv_kernel, KH=KH, KW=KW, OH=OH, OW=OW,
                               sh=sh, sw=sw, dh=dh, dw=dw)

    # VMEM budget: double-buffered image/output blocks + resident weight + headroom,
    # capped at the v7x 64 MiB per-core budget (v5e/v6e have 128 MiB).
    x_blk_bytes = Hp * _round_up(Wp, 8) * 128 * 4
    o_blk_bytes = _round_up(OH * OW, 8) * OCP * 4
    w_bytes = KH * KW * _round_up(ICP, 16) * OCP * 2
    vmem_limit = int(min(64 << 20,
                         max(16 << 20,
                             2 * (x_blk_bytes + o_blk_bytes) + w_bytes + (4 << 20))))

    cost = pl.CostEstimate(
        flops=2 * N * OH * OW * KH * KW * ICP * OCP,
        transcendentals=0,
        bytes_accessed=(N * Hp * Wp * ICP * 4
                        + KH * KW * ICP * OCP * 2
                        + N * OH * OW * OCP * 4),
    )

    out_mat = pl.pallas_call(
        kernel,
        out_shape=jax.ShapeDtypeStruct((N, OH * OW, OCP), jnp.float32),
        grid_spec=pltpu.PrefetchScalarGridSpec(
            num_scalar_prefetch=0,
            grid=(N,),                                     # one image per grid step
            in_specs=[
                pl.BlockSpec((1, Hp, Wp, ICP), lambda n: (n, 0, 0, 0)),
                pl.BlockSpec((KH * KW, ICP, OCP), lambda n: (0, 0, 0)),  # resident
                pl.BlockSpec((1, OCP), lambda n: (0, 0)),                # resident
            ],
            out_specs=pl.BlockSpec((1, OH * OW, OCP), lambda n: (n, 0, 0)),
        ),
        compiler_params=pltpu.CompilerParams(
            dimension_semantics=("parallel",),             # images split across TCs
            vmem_limit_bytes=vmem_limit),
        cost_estimate=cost,
    )(xp, w_taps, b2)

    out = out_mat.reshape(N, OH, OW, OCP)[:, :, :, :OC]    # drop zero-padded lanes
    if channels_last_out:
        return out, u_new           # NHWC (lane-dense) — preferred for TPU consumers
    # NCHW for PyTorch-interface parity; skip via channels_last_out=True when the
    # downstream consumer accepts channels-last.
    return jnp.transpose(out, (0, 3, 1, 2)), u_new


# ---------------------------------------------------------------------------
# Main: deterministic init + run + checks against lax conv references
# ---------------------------------------------------------------------------
if __name__ == "__main__":
    N, IC, OC, H, W = 2, 4, 8, 16, 16
    KH = KW = 3
    stride, padding, dilation = 1, 1, 1

    key = jax.random.PRNGKey(0)
    kx, kw_, kb, ku = jax.random.split(key, 4)

    x = jax.random.normal(kx, (N, IC, H, W), dtype=jnp.float32)

    # xavier_normal_ init for the conv weight
    fan_in = IC * KH * KW
    fan_out = OC * KH * KW
    std = (2.0 / (fan_in + fan_out)) ** 0.5
    weight = std * jax.random.normal(kw_, (OC, IC, KH, KW), dtype=jnp.float32)

    # PyTorch Conv2d default bias init: U(-1/sqrt(fan_in), 1/sqrt(fan_in))
    bound = 1.0 / (fan_in ** 0.5)
    bias = jax.random.uniform(kb, (OC,), minval=-bound, maxval=bound,
                              dtype=jnp.float32)

    # spectral-norm power-iteration buffer u (normalized gaussian, as in PyTorch)
    u = _l2_normalize(jax.random.normal(ku, (OC,), dtype=jnp.float32))

    out, u_new = spectral_norm_conv2d(x, weight, bias, u, stride=stride,
                                      padding=padding, dilation=dilation)
    out = jax.block_until_ready(out)
    assert out.shape == (N, OC, H, W), out.shape
    assert u_new.shape == u.shape

    # ---- references ------------------------------------------------------
    inv_sigma, _ = spectral_norm_stats(weight, u)
    w_sn = weight * inv_sigma

    def ref_conv(xf, wf):
        r = jax.lax.conv_general_dilated(
            xf, wf, window_strides=(stride, stride),
            padding=((padding, padding), (padding, padding)),
            rhs_dilation=(dilation, dilation),
            dimension_numbers=("NCHW", "OIHW", "NCHW"))
        r = r + bias.reshape(1, -1, 1, 1)
        return jnp.where(r >= 0.0, r, 0.2 * r)

    # Tight check: same bf16-quantized operands the kernel actually multiplies
    # (accumulation stays f32 in both paths).
    x_q = x.astype(jnp.bfloat16).astype(jnp.float32)
    w_q = w_sn.astype(jnp.bfloat16).astype(jnp.float32)
    ref_q = ref_conv(x_q, w_q)
    assert jnp.allclose(out, ref_q, rtol=1e-3, atol=1e-3)

    # Loose check vs. the full-f32 module math (difference = bf16 operand quantization).
    ref_f = ref_conv(x, w_sn)
    assert jnp.allclose(out, ref_f, rtol=5e-2, atol=5e-2)

    print("KERNEL_OK")
</pallas_src>

<mosaic_0001>
module attributes {stable_mosaic.version = 11 : i64} {
  func.func @_direct_conv_kernel(%arg0: i32, %arg1: memref<1x18x18x8xf32, #tpu.memory_space<vmem>>, %arg2: memref<9x8x128xbf16, #tpu.memory_space<vmem>>, %arg3: memref<1x128xf32, #tpu.memory_space<vmem>>, %arg4: memref<1x256x128xf32, #tpu.memory_space<vmem>>) attributes {dimension_semantics = [#tpu.dimension_semantics<parallel>], iteration_bounds = array<i64: 2>, scalar_prefetch = 0 : i64, scratch_operands = 0 : i64, tpu.core_type = #tpu.core_type<tc>, window_params = [{transform_indices = @transform_0, window_bounds = array<i64: 1, 18, 18, 8>}, {pipeline_mode = #tpu.pipeline_mode<synchronous>, transform_indices = @transform_1, window_bounds = array<i64: 9, 8, 128>}, {pipeline_mode = #tpu.pipeline_mode<synchronous>, transform_indices = @transform_2, window_bounds = array<i64: 1, 128>}, {transform_indices = @transform_3, window_bounds = array<i64: 1, 256, 128>}]} {
    %cst = arith.constant 0.000000e+00 : f32
    %0 = vector.broadcast %cst : f32 to vector<256x128xf32>
    %c0 = arith.constant 0 : index
    %c0_0 = arith.constant 0 : index
    %c0_1 = arith.constant 0 : index
    %c0_2 = arith.constant 0 : index
    %1 = vector.load %arg1[%c0, %c0_0, %c0_1, %c0_2] : memref<1x18x18x8xf32, #tpu.memory_space<vmem>>, vector<1x16x16x8xf32>
    %2 = vector.shape_cast %1 : vector<1x16x16x8xf32> to vector<16x16x8xf32>
    %3 = vector.shape_cast %2 : vector<16x16x8xf32> to vector<256x8xf32>
    %4 = arith.truncf %3 : vector<256x8xf32> to vector<256x8xbf16>
    %c0_3 = arith.constant 0 : index
    %c0_4 = arith.constant 0 : index
    %c0_5 = arith.constant 0 : index
    %5 = vector.load %arg2[%c0_3, %c0_4, %c0_5] : memref<9x8x128xbf16, #tpu.memory_space<vmem>>, vector<1x8x128xbf16>
    %6 = vector.shape_cast %5 : vector<1x8x128xbf16> to vector<8x128xbf16>
    %cst_6 = arith.constant dense<0.000000e+00> : vector<256x128xf32>
    %7 = tpu.matmul %4, %6, %cst_6 {dimension_numbers = #tpu.dot_dimension_numbers<[1], [0], [0], [1], [0, 0, 1, 1], [], []>} : vector<256x8xbf16>, vector<8x128xbf16>, vector<256x128xf32> -> vector<256x128xf32>
    %8 = arith.addf %0, %7 : vector<256x128xf32>
    %c0_7 = arith.constant 0 : index
    %c0_8 = arith.constant 0 : index
    %c1 = arith.constant 1 : index
    %c0_9 = arith.constant 0 : index
    %9 = vector.load %arg1[%c0_7, %c0_8, %c1, %c0_9] : memref<1x18x18x8xf32, #tpu.memory_space<vmem>>, vector<1x16x16x8xf32>
    %10 = vector.shape_cast %9 : vector<1x16x16x8xf32> to vector<16x16x8xf32>
    %11 = vector.shape_cast %10 : vector<16x16x8xf32> to vector<256x8xf32>
    %12 = arith.truncf %11 : vector<256x8xf32> to vector<256x8xbf16>
    %c1_10 = arith.constant 1 : index
    %c0_11 = arith.constant 0 : index
    %c0_12 = arith.constant 0 : index
    %13 = vector.load %arg2[%c1_10, %c0_11, %c0_12] : memref<9x8x128xbf16, #tpu.memory_space<vmem>>, vector<1x8x128xbf16>
    %14 = vector.shape_cast %13 : vector<1x8x128xbf16> to vector<8x128xbf16>
    %cst_13 = arith.constant dense<0.000000e+00> : vector<256x128xf32>
    %15 = tpu.matmul %12, %14, %cst_13 {dimension_numbers = #tpu.dot_dimension_numbers<[1], [0], [0], [1], [0, 0, 1, 1], [], []>} : vector<256x8xbf16>, vector<8x128xbf16>, vector<256x128xf32> -> vector<256x128xf32>
    %16 = arith.addf %8, %15 : vector<256x128xf32>
    %c0_14 = arith.constant 0 : index
    %c0_15 = arith.constant 0 : index
    %c2 = arith.constant 2 : index
    %c0_16 = arith.constant 0 : index
    %17 = vector.load %arg1[%c0_14, %c0_15, %c2, %c0_16] : memref<1x18x18x8xf32, #tpu.memory_space<vmem>>, vector<1x16x16x8xf32>
    %18 = vector.shape_cast %17 : vector<1x16x16x8xf32> to vector<16x16x8xf32>
    %19 = vector.shape_cast %18 : vector<16x16x8xf32> to vector<256x8xf32>
    %20 = arith.truncf %19 : vector<256x8xf32> to vector<256x8xbf16>
    %c2_17 = arith.constant 2 : index
    %c0_18 = arith.constant 0 : index
    %c0_19 = arith.constant 0 : index
    %21 = vector.load %arg2[%c2_17, %c0_18, %c0_19] : memref<9x8x128xbf16, #tpu.memory_space<vmem>>, vector<1x8x128xbf16>
    %22 = vector.shape_cast %21 : vector<1x8x128xbf16> to vector<8x128xbf16>
    %cst_20 = arith.constant dense<0.000000e+00> : vector<256x128xf32>
    %23 = tpu.matmul %20, %22, %cst_20 {dimension_numbers = #tpu.dot_dimension_numbers<[1], [0], [0], [1], [0, 0, 1, 1], [], []>} : vector<256x8xbf16>, vector<8x128xbf16>, vector<256x128xf32> -> vector<256x128xf32>
    %24 = arith.addf %16, %23 : vector<256x128xf32>
    %c0_21 = arith.constant 0 : index
    %c1_22 = arith.constant 1 : index
    %c0_23 = arith.constant 0 : index
    %c0_24 = arith.constant 0 : index
    %25 = vector.load %arg1[%c0_21, %c1_22, %c0_23, %c0_24] : memref<1x18x18x8xf32, #tpu.memory_space<vmem>>, vector<1x16x16x8xf32>
    %26 = vector.shape_cast %25 : vector<1x16x16x8xf32> to vector<16x16x8xf32>
    %27 = vector.shape_cast %26 : vector<16x16x8xf32> to vector<256x8xf32>
    %28 = arith.truncf %27 : vector<256x8xf32> to vector<256x8xbf16>
    %c3 = arith.constant 3 : index
    %c0_25 = arith.constant 0 : index
    %c0_26 = arith.constant 0 : index
    %29 = vector.load %arg2[%c3, %c0_25, %c0_26] : memref<9x8x128xbf16, #tpu.memory_space<vmem>>, vector<1x8x128xbf16>
    %30 = vector.shape_cast %29 : vector<1x8x128xbf16> to vector<8x128xbf16>
    %cst_27 = arith.constant dense<0.000000e+00> : vector<256x128xf32>
    %31 = tpu.matmul %28, %30, %cst_27 {dimension_numbers = #tpu.dot_dimension_numbers<[1], [0], [0], [1], [0, 0, 1, 1], [], []>} : vector<256x8xbf16>, vector<8x128xbf16>, vector<256x128xf32> -> vector<256x128xf32>
    %32 = arith.addf %24, %31 : vector<256x128xf32>
    %c0_28 = arith.constant 0 : index
    %c1_29 = arith.constant 1 : index
    %c1_30 = arith.constant 1 : index
    %c0_31 = arith.constant 0 : index
    %33 = vector.load %arg1[%c0_28, %c1_29, %c1_30, %c0_31] : memref<1x18x18x8xf32, #tpu.memory_space<vmem>>, vector<1x16x16x8xf32>
    %34 = vector.shape_cast %33 : vector<1x16x16x8xf32> to vector<16x16x8xf32>
    %35 = vector.shape_cast %34 : vector<16x16x8xf32> to vector<256x8xf32>
    %36 = arith.truncf %35 : vector<256x8xf32> to vector<256x8xbf16>
    %c4 = arith.constant 4 : index
    %c0_32 = arith.constant 0 : index
    %c0_33 = arith.constant 0 : index
    %37 = vector.load %arg2[%c4, %c0_32, %c0_33] : memref<9x8x128xbf16, #tpu.memory_space<vmem>>, vector<1x8x128xbf16>
    %38 = vector.shape_cast %37 : vector<1x8x128xbf16> to vector<8x128xbf16>
    %cst_34 = arith.constant dense<0.000000e+00> : vector<256x128xf32>
    %39 = tpu.matmul %36, %38, %cst_34 {dimension_numbers = #tpu.dot_dimension_numbers<[1], [0], [0], [1], [0, 0, 1, 1], [], []>} : vector<256x8xbf16>, vector<8x128xbf16>, vector<256x128xf32> -> vector<256x128xf32>
    %40 = arith.addf %32, %39 : vector<256x128xf32>
    %c0_35 = arith.constant 0 : index
    %c1_36 = arith.constant 1 : index
    %c2_37 = arith.constant 2 : index
    %c0_38 = arith.constant 0 : index
    %41 = vector.load %arg1[%c0_35, %c1_36, %c2_37, %c0_38] : memref<1x18x18x8xf32, #tpu.memory_space<vmem>>, vector<1x16x16x8xf32>
    %42 = vector.shape_cast %41 : vector<1x16x16x8xf32> to vector<16x16x8xf32>
    %43 = vector.shape_cast %42 : vector<16x16x8xf32> to vector<256x8xf32>
    %44 = arith.truncf %43 : vector<256x8xf32> to vector<256x8xbf16>
    %c5 = arith.constant 5 : index
    %c0_39 = arith.constant 0 : index
    %c0_40 = arith.constant 0 : index
    %45 = vector.load %arg2[%c5, %c0_39, %c0_40] : memref<9x8x128xbf16, #tpu.memory_space<vmem>>, vector<1x8x128xbf16>
    %46 = vector.shape_cast %45 : vector<1x8x128xbf16> to vector<8x128xbf16>
    %cst_41 = arith.constant dense<0.000000e+00> : vector<256x128xf32>
    %47 = tpu.matmul %44, %46, %cst_41 {dimension_numbers = #tpu.dot_dimension_numbers<[1], [0], [0], [1], [0, 0, 1, 1], [], []>} : vector<256x8xbf16>, vector<8x128xbf16>, vector<256x128xf32> -> vector<256x128xf32>
    %48 = arith.addf %40, %47 : vector<256x128xf32>
    %c0_42 = arith.constant 0 : index
    %c2_43 = arith.constant 2 : index
    %c0_44 = arith.constant 0 : index
    %c0_45 = arith.constant 0 : index
    %49 = vector.load %arg1[%c0_42, %c2_43, %c0_44, %c0_45] : memref<1x18x18x8xf32, #tpu.memory_space<vmem>>, vector<1x16x16x8xf32>
    %50 = vector.shape_cast %49 : vector<1x16x16x8xf32> to vector<16x16x8xf32>
    %51 = vector.shape_cast %50 : vector<16x16x8xf32> to vector<256x8xf32>
    %52 = arith.truncf %51 : vector<256x8xf32> to vector<256x8xbf16>
    %c6 = arith.constant 6 : index
    %c0_46 = arith.constant 0 : index
    %c0_47 = arith.constant 0 : index
    %53 = vector.load %arg2[%c6, %c0_46, %c0_47] : memref<9x8x128xbf16, #tpu.memory_space<vmem>>, vector<1x8x128xbf16>
    %54 = vector.shape_cast %53 : vector<1x8x128xbf16> to vector<8x128xbf16>
    %cst_48 = arith.constant dense<0.000000e+00> : vector<256x128xf32>
    %55 = tpu.matmul %52, %54, %cst_48 {dimension_numbers = #tpu.dot_dimension_numbers<[1], [0], [0], [1], [0, 0, 1, 1], [], []>} : vector<256x8xbf16>, vector<8x128xbf16>, vector<256x128xf32> -> vector<256x128xf32>
    %56 = arith.addf %48, %55 : vector<256x128xf32>
    %c0_49 = arith.constant 0 : index
    %c2_50 = arith.constant 2 : index
    %c1_51 = arith.constant 1 : index
    %c0_52 = arith.constant 0 : index
    %57 = vector.load %arg1[%c0_49, %c2_50, %c1_51, %c0_52] : memref<1x18x18x8xf32, #tpu.memory_space<vmem>>, vector<1x16x16x8xf32>
    %58 = vector.shape_cast %57 : vector<1x16x16x8xf32> to vector<16x16x8xf32>
    %59 = vector.shape_cast %58 : vector<16x16x8xf32> to vector<256x8xf32>
    %60 = arith.truncf %59 : vector<256x8xf32> to vector<256x8xbf16>
    %c7 = arith.constant 7 : index
    %c0_53 = arith.constant 0 : index
    %c0_54 = arith.constant 0 : index
    %61 = vector.load %arg2[%c7, %c0_53, %c0_54] : memref<9x8x128xbf16, #tpu.memory_space<vmem>>, vector<1x8x128xbf16>
    %62 = vector.shape_cast %61 : vector<1x8x128xbf16> to vector<8x128xbf16>
    %cst_55 = arith.constant dense<0.000000e+00> : vector<256x128xf32>
    %63 = tpu.matmul %60, %62, %cst_55 {dimension_numbers = #tpu.dot_dimension_numbers<[1], [0], [0], [1], [0, 0, 1, 1], [], []>} : vector<256x8xbf16>, vector<8x128xbf16>, vector<256x128xf32> -> vector<256x128xf32>
    %64 = arith.addf %56, %63 : vector<256x128xf32>
    %c0_56 = arith.constant 0 : index
    %c2_57 = arith.constant 2 : index
    %c2_58 = arith.constant 2 : index
    %c0_59 = arith.constant 0 : index
    %65 = vector.load %arg1[%c0_56, %c2_57, %c2_58, %c0_59] : memref<1x18x18x8xf32, #tpu.memory_space<vmem>>, vector<1x16x16x8xf32>
    %66 = vector.shape_cast %65 : vector<1x16x16x8xf32> to vector<16x16x8xf32>
    %67 = vector.shape_cast %66 : vector<16x16x8xf32> to vector<256x8xf32>
    %68 = arith.truncf %67 : vector<256x8xf32> to vector<256x8xbf16>
    %c8 = arith.constant 8 : index
    %c0_60 = arith.constant 0 : index
    %c0_61 = arith.constant 0 : index
    %69 = vector.load %arg2[%c8, %c0_60, %c0_61] : memref<9x8x128xbf16, #tpu.memory_space<vmem>>, vector<1x8x128xbf16>
    %70 = vector.shape_cast %69 : vector<1x8x128xbf16> to vector<8x128xbf16>
    %cst_62 = arith.constant dense<0.000000e+00> : vector<256x128xf32>
    %71 = tpu.matmul %68, %70, %cst_62 {dimension_numbers = #tpu.dot_dimension_numbers<[1], [0], [0], [1], [0, 0, 1, 1], [], []>} : vector<256x8xbf16>, vector<8x128xbf16>, vector<256x128xf32> -> vector<256x128xf32>
    %72 = arith.addf %64, %71 : vector<256x128xf32>
    %c0_63 = arith.constant 0 : index
    %c0_64 = arith.constant 0 : index
    %73 = vector.load %arg3[%c0_63, %c0_64] : memref<1x128xf32, #tpu.memory_space<vmem>>, vector<1x128xf32>
    %74 = vector.broadcast %73 : vector<1x128xf32> to vector<256x128xf32>
    %75 = arith.addf %72, %74 : vector<256x128xf32>
    %cst_65 = arith.constant 0.000000e+00 : f32
    %76 = vector.broadcast %cst_65 : f32 to vector<256x128xf32>
    %77 = arith.cmpf oge, %75, %76 : vector<256x128xf32>
    %cst_66 = arith.constant 2.000000e-01 : f32
    %78 = vector.broadcast %cst_66 : f32 to vector<256x128xf32>
    %79 = arith.mulf %78, %75 : vector<256x128xf32>
    %80 = arith.select %77, %75, %79 : vector<256x128xi1>, vector<256x128xf32>
    %c0_67 = arith.constant 0 : index
    %c0_68 = arith.constant 0 : index
    %c0_69 = arith.constant 0 : index
    %81 = vector.load %arg4[%c0_67, %c0_68, %c0_69] : memref<1x256x128xf32, #tpu.memory_space<vmem>>, vector<1x256x128xf32>
    %82 = vector.shape_cast %81 : vector<1x256x128xf32> to vector<256x128xf32>
    %83 = vector.shape_cast %80 : vector<256x128xf32> to vector<1x256x128xf32>
    tpu.vector_store %arg4[%c0_67, %c0_68, %c0_69], %83 {strides = array<i32>} : memref<1x256x128xf32, #tpu.memory_space<vmem>>, vector<1x256x128xf32>,
    return
  }
  func.func @transform_0(%arg0: i32) -> (i32, i32, i32, i32) {
    %c0_i32 = arith.constant 0 : i32
    %c0_i32_0 = arith.constant 0 : i32
    %c0_i32_1 = arith.constant 0 : i32
    %c0_i32_2 = arith.constant 0 : i32
    return %arg0, %c0_i32, %c0_i32_0, %c0_i32_1 : i32, i32, i32, i32
  }
  func.func @transform_1(%arg0: i32) -> (i32, i32, i32) {
    %c0_i32 = arith.constant 0 : i32
    %c0_i32_0 = arith.constant 0 : i32
    %c0_i32_1 = arith.constant 0 : i32
    %c0_i32_2 = arith.constant 0 : i32
    return %c0_i32, %c0_i32_0, %c0_i32_1 : i32, i32, i32
  }
  func.func @transform_2(%arg0: i32) -> (i32, i32) {
    %c0_i32 = arith.constant 0 : i32
    %c0_i32_0 = arith.constant 0 : i32
    %c0_i32_1 = arith.constant 0 : i32
    return %c0_i32, %c0_i32_0 : i32, i32
  }
  func.func @transform_3(%arg0: i32) -> (i32, i32, i32) {
    %c0_i32 = arith.constant 0 : i32
    %c0_i32_0 = arith.constant 0 : i32
    %c0_i32_1 = arith.constant 0 : i32
    return %arg0, %c0_i32, %c0_i32_0 : i32, i32, i32
  }
}

</mosaic_0001>

<bundles_post_ra>
// kernel: tpu_custom_call.1
= control target key start
LH: loop header
LB: loop body
LE: loop exit
PB: predicated region body
PF: predicated region fallthrough
CT: control target
= control target key end

     0   :  { %8 = vsyncpa [#allocation3], 0  ;;  %s4961_s0 = inlined_call_operand.vmem [shape: f32[2,18,18,8], index: 0, kind: input, shape index: {}]   ;;  %s4962_s1 = inlined_call_operand.vmem [shape: bf16[9,8,128], index: 1, kind: input, shape index: {}]   ;;  %s4963_s2 = inlined_call_operand.vmem [shape: f32[1,128], index: 2, kind: input, shape index: {}]   ;;  %s4964_s3 = inlined_call_operand.hbm [shape: f32[2,256,128], index: 3, kind: output, shape index: {}]  }
   0x1   :  { %10 = vsyncpa [#allocation3 + $0x1], 0  ;;  %s4211_s12 = smov 0   ;;  %s4213_s13 = smov 0  }
   0x2   :  { %s4215_s14 = smov 0   ;;  %s4217_s15 = smov 0  }
   0x3 LB: > { %s4232_s16 = sadd.s32 4294967295, %s4186_s15   ;;  %s2998_s17 = sadd.s32 4294967294, %s4186_s15   ;;  %s4186_s15 = sphi %s4217_s15, %s4970_s15   ;;  %s4182_s14 = sphi %s4215_s14, %s4969_s14   ;;  %s4178_s13 = sphi %s4213_s13, %s4968_s13   ;;  %s4174_s12 = sphi %s4211_s12, %s4967_s12  }
   0x4   : > { %s4236_s18 = sadd.s32 1, %s4186_s15   ;;  %s91_s19 = sadd.s32 1, %s4182_s14 }
   0x5   : > { %s88_s20 = ssub.s32 %s4186_s15, %s4236_s18  ;;  %p101_p0 = scmp.ne.s32.totalorder %s4182_s14, %s4178_s13 }
   0x6   : > { %p89_p1 = scmp.eq.s32.totalorder %s88_s20, 0  ;;  %p102_p2 = scmp.eq.s32.totalorder %s4232_s16, 1 }
   0x7   : > { %p107_p3 = scmp.ne.s32.totalorder %s4178_s13, %s4174_s12  ;;  %p108_p4 = scmp.eq.s32.totalorder %s2998_s17, 1 }
   0x8   : > { %s4247_s21 = scalar_select %p89_p1, %s4182_s14, %s91_s19  }
   0x9   : > { %p4249_p5 = por %p102_p2, %p101_p0  ;;  %p4253_p6 = por %p108_p4, %p107_p3 }
   0xa   : > { %p3001_p7 = scmp.ge.s32.totalorder %s4186_s15, 1  ;;  %p140_p8 = scmp.lt.s32.totalorder %s4186_s15, 3 }
   0xc   : > { %p141_p9 = pnand %p3001_p7, %p140_p8 }
   0xd   : > { %v3004_v0 = vld [vmem:[%s4962_s1 + $0x4] sm:$0xf] (!%p141_p9)  ;;  %vm318_vm0 = vcmask (!%p141_p9), 1043456   ;;  %v4265_v1 = vld [vmem:[%s4962_s1 + $0x10] sm:$0xf] (!%p141_p9)  ;;  %p164_p10 = scmp.lt.s32.totalorder (!%p141_p9), %s4232_s16, 1 }
   0xe   : > { %144 = sbr.rel (%p141_p9) target bundleno = 548 (0x224), region = 32  ;;  %4072 = vmatprep.subr.msk.bf16.mxu1 (!%p141_p9), %vm318_vm0, %v3004_v0  ;;  %4076 = vmatprep.subr.msk.bf16.mxu0 (!%p141_p9), %vm318_vm0, %v4265_v1  ;;  %v320_v2 = vsel (!%p141_p9), %vm318_vm0, %v3004_v0, 0  ;;  %v4274_v3 = vsel (!%p141_p9), %vm318_vm0, %v4265_v1, 0  ;;  %v218_v4 = vld [vmem:[%s4962_s1] sm:$0xf] (!%p141_p9)  ;;  %vm269_vm1 = vcmask (!%p141_p9), 64512  }
   0xf   : > { %3509 = vmatpush3.bf16.msra.mxu1 (!%p141_p9), %v320_v2  ;;  %3645 = vmatpush3.bf16.msra.mxu0 (!%p141_p9), %v4274_v3  ;;  %v3184_v5 = vld [vmem:[%s4962_s1 + $0x14] sm:$0xf] (!%p141_p9)  ;;  %v532_v14 = vsel (!%p141_p9), %vm318_vm0, %v218_v4, 0  ;;  %v3233_v20 = vld [vmem:[%s4962_s1 + $0x18] sm:$0xf] (!%p141_p9)  ;;  %s161_s29 = sand.u32 (!%p141_p9), 1, %s4178_s13  }
  0x10   : > { %4073 = vmatprep.subr.msk.bf16.mxu1 (!%p141_p9), %vm318_vm0, %v218_v4  ;;  %4078 = vmatprep.subr.msk.bf16.mxu0 (!%p141_p9), %vm318_vm0, %v3184_v5  ;;  %v1677_v18 = vsel (!%p141_p9), %vm318_vm0, %v3184_v5, 0  ;;  %v4316_v21 = vld [vmem:[%s4962_s1 + $0x8] sm:$0xf] (!%p141_p9)  ;;  %v1972_v52 = vsel (!%p141_p9), %vm318_vm0, %v3233_v20, 0  ;;  %v4395_v53 = vld [vmem:[%s4962_s1 + $0x1c] sm:$0xf] (!%p141_p9) }
  0x11   : > { %s3002_s5 = sshll.u32 (!%p141_p9), %s161_s29, 8  ;;  %s3354_s7 = sshll.u32 (!%p141_p9), %s4232_s16, 12 }
  0x12   : > { %s4920_s11 = scalar_lea.sflag (!%p141_p9), [#allocation3], %s161_s29  ;;  %s4188_s19 = smov (!%p141_p9), [#allocation2]  }
  0x13   : > { %s4128_s20 = sshll.u32 (!%p141_p9), %s4188_s19, 4  ;;  %s4129_s20 = int_to_ptr.vmem [resolvable:$false] %s4128_s20 }
  0x14   : > { %s4130_s24 = scalar_lea.vmem (!%p141_p9), %s4129_s20, 8192 }
  0x15   : > { %s165_s30 = scalar_select %p164_p10, %s4232_s16, 1 }
  0x16   : > { %s4911_s16 = scalar_lea.hbm %s4964_s3, %s3354_s7 }
  0x17   : > { %s4082_s6 = smul.u32 432, %s165_s30 }
  0x19   : > { %s4289_s9 = scalar_lea.vmem %s4961_s0, %s4082_s6  ;;  %s4839_s6 = scalar_lea.vmem [#allocation2], %s3002_s5 }
  0x1a   : > { %v219_v6 = vld [vmem:[%s4289_s9 + $0x1] sm:$0xff]  ;;  %v220_v7 = vld [vmem:[%s4289_s9 + $0x9] sm:$0xff]  ;;  %v3103_v8 = vld [vmem:[%s4289_s9 + $0x19] sm:$0xff]  ;;  %s2936_s8 = sshll.u32 %s4839_s6, 4  ;;  %s4913_s8 = int_to_ptr.vmem [resolvable:$true] %s2936_s8 }
  0x1b   : > { %v251_v9 = vpack.c.bf16 %v220_v7, %v219_v6  ;;  %v3104_v10 = vld [vmem:[%s4289_s9 + $0x21] sm:$0xff]  ;;  %v3105_v11 = vld [vmem:[%s4289_s9 + $0x31] sm:$0xff]  ;;  %v3106_v12 = vld [vmem:[%s4289_s9 + $0x39] sm:$0xff]  ;;  %s4124_s17 = scalar_lea.vmem %s4913_s8, 4096  ;;  %p4131_p0 = scmp.lt.s32.totalorder %s4913_s8, %s4129_s20 }
  0x1c   : > { %v1316_v13 = vpack.c.bf16 %v3104_v10, %v3103_v8  ;;  %v4298_v15 = vpack.c.bf16 %v3106_v12, %v3105_v11  ;;  %v3107_v16 = vld [vmem:[%s4289_s9 + $0x49] sm:$0xff]  ;;  %v3108_v17 = vld [vmem:[%s4289_s9 + $0x51] sm:$0xff]  ;;  %v3109_v22 = vld [vmem:[%s4289_s9 + $0x61] sm:$0xff]  ;;  %p4125_p11 = scmp.ne.s32.totalorder %s4913_s8, %s4124_s17  ;;  %p4132_p1 = scmp.lt.s32.totalorder %s4130_s24, %s4124_s17 }
  0x1d   : > { %3510 = vmatprep.mubr.msk.bf16.mxu1 %vm269_vm1, %v251_v9  ;;  %v4304_v19 = vpack.c.bf16 %v3108_v17, %v3107_v16  ;;  %v3110_v23 = vld [vmem:[%s4289_s9 + $0x69] sm:$0xff]  ;;  %v3111_v24 = vld [vmem:[%s4289_s9 + $0x79] sm:$0xff]  ;;  %v3112_v25 = vld [vmem:[%s4289_s9 + $0x81] sm:$0xff] }
  0x1e   : > { %3646 = vmatprep.mubr.msk.bf16.mxu0 %vm269_vm1, %v1316_v13  ;;  %3511 = vmatmul.mubr.msk.bf16.vlgmr.msra.gmra.mrb[0].mxu1 %vm269_vm1, %v1316_v13  ;;  %v4329_v26 = vpack.c.bf16 %v3110_v23, %v3109_v22  ;;  %v4331_v27 = vpack.c.bf16 %v3112_v25, %v3111_v24  ;;  %v3113_v28 = vld [vmem:[%s4289_s9 + $0x91] sm:$0xff]  ;;  %v3114_v29 = vld [vmem:[%s4289_s9 + $0x99] sm:$0xff]  ;;  %v3115_v30 = vld [vmem:[%s4289_s9 + $0xa9] sm:$0xff]  ;;  %p4126_p12 = pnand %p4125_p11, %p4249_p5  ;;  %p4133_p2 = por %p4132_p1, %p4131_p0 }
  0x1f   : > { %3543 = vmatpush3.bf16.msra.mxu1 %v532_v14  ;;  %3647 = vmatmul.mubr.msk.bf16.vlgmr.msra.gmra.mrb[0].mxu0 %vm269_vm1, %v4298_v15  ;;  %v3116_v31 = vld [vmem:[%s4289_s9 + $0xb1] sm:$0xff]  ;;  %v4345_v32 = vpack.c.bf16 %v3114_v29, %v3113_v28  ;;  %v3117_v34 = vld [vmem:[%s4289_s9 + $0xc1] sm:$0xff]  ;;  %v3118_v35 = vld [vmem:[%s4289_s9 + $0xc9] sm:$0xff] }
  0x20   : > { %3679 = vmatpush3.bf16.msra.mxu0 %v1677_v18  ;;  %3514 = vmatprep.mubr.msk.bf16.mxu1 %vm269_vm1, %v4298_v15  ;;  %v4347_v33 = vpack.c.bf16 %v3116_v31, %v3115_v30  ;;  %v3152_v36 = vld [vmem:[%s4289_s9 + $0x1a] sm:$0xff]  ;;  %v3153_v37 = vld [vmem:[%s4289_s9 + $0x22] sm:$0xff]  ;;  %v4361_v38 = vpack.c.bf16 %v3118_v35, %v3117_v34  ;;  %v3154_v42 = vld [vmem:[%s4289_s9 + $0x32] sm:$0xff]  ;;  %p4127_p13 = pneg %p4126_p12 }
  0x21   : > { %3650 = vmatprep.mubr.msk.bf16.mxu0 %vm269_vm1, %v4304_v19  ;;  %4079 = vmatprep.subr.msk.bf16.mxu0 %vm318_vm0, %v3233_v20  ;;  %v4363_v39 = vpack.c.bf16 %v3153_v37, %v3152_v36  ;;  %v237_v40 = vld [vmem:[%s4289_s9 + $0xd9] sm:$0xff]  ;;  %v238_v41 = vld [vmem:[%s4289_s9 + $0xe1] sm:$0xff]  ;;  %v239_v44 = vld [vmem:[%s4289_s9 + $0xf1] sm:$0xff] }
  0x22   : > { %4074 = vmatprep.subr.msk.bf16.mxu1 %vm318_vm0, %v4316_v21  ;;  %v3155_v43 = vld [vmem:[%s4289_s9 + $0x3a] sm:$0xff]  ;;  %v3156_v46 = vld [vmem:[%s4289_s9 + $0x4a] sm:$0xff]  ;;  %v3157_v47 = vld [vmem:[%s4289_s9 + $0x52] sm:$0xff]  ;;  %v4381_v48 = vpack.c.bf16 %v238_v41, %v237_v40  ;;  %p4134_p3 = pnand %p4133_p2, %p4127_p13 }
  0x23   : > { %v240_v45 = vld [vmem:[%s4289_s9 + $0xf9] sm:$0xff]  ;;  %v4383_v49 = vpack.c.bf16 %v3155_v43, %v3154_v42  ;;  %v4387_v51 = vpack.c.bf16 %v3157_v47, %v3156_v46  ;;  %v241_v54 = vld [vmem:[%s4289_s9 + $0x109] sm:$0xff]  ;;  %v242_v55 = vld [vmem:[%s4289_s9 + $0x111] sm:$0xff]  ;;  %v794_v47 = vsel %vm318_vm0, %v4316_v21, 0 }
  0x24   : > { %v4385_v50 = vpack.c.bf16 %v240_v45, %v239_v44  ;;  %v3158_v56 = vld [vmem:[%s4289_s9 + $0x62] sm:$0xff]  ;;  %v3159_v57 = vld [vmem:[%s4289_s9 + $0x6a] sm:$0xff]  ;;  %v3160_v60 = vld [vmem:[%s4289_s9 + $0x7a] sm:$0xff]  ;;  %v4413_v62 = vpack.c.bf16 %v242_v55, %v241_v54 }
  0x25   : > { %v243_v58 = vld [vmem:[%s4289_s9 + $0x121] sm:$0xff]  ;;  %v244_v59 = vld [vmem:[%s4289_s9 + $0x129] sm:$0xff]  ;;  %v4415_v63 = vpack.c.bf16 %v3159_v57, %v3158_v56  ;;  %v245_v4 = vld [vmem:[%s4289_s9 + $0x139] sm:$0xff] }
  0x26   : > { %3515 = vmatmul.mubr.msk.bf16.gmra.mrb[4].mxu1 %vm269_vm1, %v4304_v19  ;;  %v3161_v61 = vld [vmem:[%s4289_s9 + $0x82] sm:$0xff]  ;;  %v4417_v0 = vpack.c.bf16 %v244_v59, %v243_v58  ;;  %v3162_v6 = vld [vmem:[%s4289_s9 + $0x92] sm:$0xff]  ;;  %v3163_v7 = vld [vmem:[%s4289_s9 + $0x9a] sm:$0xff] }
  0x27   : > { %3651 = vmatmul.mubr.msk.bf16.gmra.mrb[4].mxu0 %vm269_vm1, %v4329_v26  ;;  %3518 = vmatprep.mubr.msk.bf16.mxu1 %vm269_vm1, %v4329_v26  ;;  %v4419_v2 = vpack.c.bf16 %v3161_v61, %v3160_v60  ;;  %v246_v5 = vld [vmem:[%s4289_s9 + $0x141] sm:$0xff]  ;;  %v247_v8 = vld [vmem:[%s4289_s9 + $0x151] sm:$0xff]  ;;  %v248_v9 = vld [vmem:[%s4289_s9 + $0x159] sm:$0xff]  ;;  %v4439_v13 = vpack.c.bf16 %v3163_v7, %v3162_v6 }
  0x28   : > { %3654 = vmatprep.mubr.msk.bf16.mxu0 %vm269_vm1, %v4331_v27  ;;  %v3164_v10 = vld [vmem:[%s4289_s9 + $0xaa] sm:$0xff]  ;;  %v3165_v11 = vld [vmem:[%s4289_s9 + $0xb2] sm:$0xff]  ;;  %v4437_v12 = vpack.c.bf16 %v246_v5, %v245_v4  ;;  %v4441_v14 = vpack.c.bf16 %v248_v9, %v247_v8  ;;  %v3166_v20 = vld [vmem:[%s4289_s9 + $0xc2] sm:$0xff] }
  0x29   : > { %v4443_v16 = vpack.c.bf16 %v3165_v11, %v3164_v10  ;;  %v249_v17 = vld [vmem:[%s4289_s9 + $0x169] sm:$0xff]  ;;  %v250_v18 = vld [vmem:[%s4289_s9 + $0x171] sm:$0xff]  ;;  %v170_v23 = vld [vmem:[%s4289_s9] sm:$0xff] }
  0x2a   : > { %v3167_v22 = vld [vmem:[%s4289_s9 + $0xca] sm:$0xff]  ;;  %v3168_v25 = vld [vmem:[%s4289_s9 + $0xda] sm:$0xff]  ;;  %v3169_v28 = vld [vmem:[%s4289_s9 + $0xe2] sm:$0xff]  ;;  %v4461_v29 = vpack.c.bf16 %v250_v18, %v249_v17 }
  0x2b   : > { %v171_v24 = vld [vmem:[%s4289_s9 + $0x8] sm:$0xff]  ;;  %v4463_v30 = vpack.c.bf16 %v3167_v22, %v3166_v20  ;;  %v4465_v34 = vpack.c.bf16 %v3169_v28, %v3168_v25  ;;  %v172_v35 = vld [vmem:[%s4289_s9 + $0x18] sm:$0xff]  ;;  %v173_v36 = vld [vmem:[%s4289_s9 + $0x20] sm:$0xff] }
  0x2c   : > { %v202_v31 = vpack.c.bf16 %v171_v24, %v170_v23  ;;  %v3170_v37 = vld [vmem:[%s4289_s9 + $0xf2] sm:$0xff]  ;;  %v3171_v40 = vld [vmem:[%s4289_s9 + $0xfa] sm:$0xff]  ;;  %v3172_v43 = vld [vmem:[%s4289_s9 + $0x10a] sm:$0xff]  ;;  %v4482_v45 = vpack.c.bf16 %v173_v36, %v172_v35 }
  0x2d   : > { %v174_v41 = vld [vmem:[%s4289_s9 + $0x30] sm:$0xff]  ;;  %v175_v42 = vld [vmem:[%s4289_s9 + $0x38] sm:$0xff]  ;;  %v4484_v46 = vpack.c.bf16 %v3171_v40, %v3170_v37  ;;  %v4497_v55 = vld [vmem:[%s4962_s1 + $0xc] sm:$0xf] }
  0x2e   : > { %3519 = vmatmul.mubr.msk.bf16.gmra.mrb[8].mxu1 %vm269_vm1, %v4331_v27  ;;  %v3173_v44 = vld [vmem:[%s4289_s9 + $0x112] sm:$0xff]  ;;  %v176_v56 = vld [vmem:[%s4289_s9 + $0x48] sm:$0xff]  ;;  %v178_v59 = vld [vmem:[%s4289_s9 + $0x60] sm:$0xff] }
  0x2f   : > { %3655 = vmatmul.mubr.msk.bf16.gmra.mrb[8].mxu0 %vm269_vm1, %v4345_v32  ;;  %3522 = vmatprep.mubr.msk.bf16.mxu1 %vm269_vm1, %v4345_v32  ;;  %v4490_v54 = vpack.c.bf16 %v3173_v44, %v3172_v43  ;;  %v177_v57 = vld [vmem:[%s4289_s9 + $0x50] sm:$0xff]  ;;  %v3174_v21 = vld [vmem:[%s4289_s9 + $0x122] sm:$0xff]  ;;  %v3176_v61 = vld [vmem:[%s4289_s9 + $0x13a] sm:$0xff] }
  0x30   : > { %3658 = vmatprep.mubr.msk.bf16.mxu0 %vm269_vm1, %v4347_v33  ;;  %v3175_v58 = vld [vmem:[%s4289_s9 + $0x12a] sm:$0xff]  ;;  %v3177_v4 = vld [vmem:[%s4289_s9 + $0x142] sm:$0xff]  ;;  %v4515_v5 = vpack.c.bf16 %v177_v57, %v176_v56  ;;  %v180_v9 = vld [vmem:[%s4289_s9 + $0x78] sm:$0xff] }
  0x31   : > { %v179_v60 = vld [vmem:[%s4289_s9 + $0x68] sm:$0xff]  ;;  %v4517_v6 = vpack.c.bf16 %v3175_v58, %v3174_v21  ;;  %v4521_v8 = vpack.c.bf16 %v3177_v4, %v3176_v61  ;;  %v181_v10 = vld [vmem:[%s4289_s9 + $0x80] sm:$0xff]  ;;  %v3178_v11 = vld [vmem:[%s4289_s9 + $0x152] sm:$0xff]  ;;  %v2266_v61 = vsel %vm318_vm0, %v4395_v53, 0 }
  0x32   : > { %v4519_v7 = vpack.c.bf16 %v179_v60, %v178_v59  ;;  %v3179_v17 = vld [vmem:[%s4289_s9 + $0x15a] sm:$0xff]  ;;  %v182_v18 = vld [vmem:[%s4289_s9 + $0x90] sm:$0xff]  ;;  %v4539_v24 = vpack.c.bf16 %v181_v10, %v180_v9  ;;  %v184_v35 = vld [vmem:[%s4289_s9 + $0xa8] sm:$0xff] }
  0x33   : > { %v183_v20 = vld [vmem:[%s4289_s9 + $0x98] sm:$0xff]  ;;  %v3180_v22 = vld [vmem:[%s4289_s9 + $0x16a] sm:$0xff]  ;;  %v4541_v25 = vpack.c.bf16 %v3179_v17, %v3178_v11  ;;  %v3182_v37 = vld [vmem:[%s4289_s9 + $0x182] sm:$0xff] }
  0x34   : > { %v3181_v23 = vld [vmem:[%s4289_s9 + $0x172] sm:$0xff]  ;;  %v4543_v28 = vpack.c.bf16 %v183_v20, %v182_v18  ;;  %v3183_v40 = vld [vmem:[%s4289_s9 + $0x18a] sm:$0xff]  ;;  %v189_v57 = vld [vmem:[%s4289_s9 + $0xe0] sm:$0xff] }
  0x35   : > { %v185_v36 = vld [vmem:[%s4289_s9 + $0xb0] sm:$0xff]  ;;  %v4563_v44 = vpack.c.bf16 %v3183_v40, %v3182_v37  ;;  %v188_v56 = vld [vmem:[%s4289_s9 + $0xd8] sm:$0xff]  ;;  %v3331_v4 = vld [vmem:[%s4962_s1 + $0x20] sm:$0xf] }
  0x36   : > { %3523 = vmatmul.mubr.msk.bf16.gmra.mrb[12].mxu1 %vm269_vm1, %v4347_v33  ;;  %v4561_v43 = vpack.c.bf16 %v185_v36, %v184_v35  ;;  %v190_v21 = vld [vmem:[%s4289_s9 + $0xf0] sm:$0xff]  ;;  %v191_v58 = vld [vmem:[%s4289_s9 + $0xf8] sm:$0xff]  ;;  %v4579_v59 = vpack.c.bf16 %v189_v57, %v188_v56  ;;  %v192_v9 = vld [vmem:[%s4289_s9 + $0x108] sm:$0xff] }
  0x37   : > { %3659 = vmatmul.mubr.msk.bf16.gmra.mrb[12].mxu0 %vm269_vm1, %v4361_v38  ;;  %3526 = vmatprep.mubr.msk.bf16.mxu1 %vm269_vm1, %v4361_v38  ;;  %v4581_v60 = vpack.c.bf16 %v191_v58, %v190_v21  ;;  %v193_v10 = vld [vmem:[%s4289_s9 + $0x110] sm:$0xff]  ;;  %v195_v11 = vld [vmem:[%s4289_s9 + $0x128] sm:$0xff]  ;;  %v196_v20 = vld [vmem:[%s4289_s9 + $0x138] sm:$0xff]  ;;  %v1089_v58 = vsel %vm318_vm0, %v4497_v55, 0 }
  0x38   : > { %3680 = vmatprep.mubr.msk.bf16.mxu0 %vm269_vm1, %v4363_v39  ;;  %v4601_v17 = vpack.c.bf16 %v193_v10, %v192_v9  ;;  %v199_v35 = vld [vmem:[%s4289_s9 + $0x158] sm:$0xff]  ;;  %v200_v40 = vld [vmem:[%s4289_s9 + $0x168] sm:$0xff]  ;;  %v3232_v9 = vld [vmem:[%s4289_s9 + $0x1a0] sm:$0xff] }
  0x39   : > { %v696_v56 = vld [vmem:[%s4289_s9 + $0xa] sm:$0xff] }
  0x3e   : > { %3527 = vmatmul.mubr.msk.bf16.gmra.mrb[16].mxu1 %vm269_vm1, %v4381_v48 }
  0x3f   : > { %3681 = vmatmul.mubr.msk.bf16.vlgmr.msra.gmra.mrb[0].mxu0 %vm269_vm1, %v4383_v49  ;;  %3530 = vmatprep.mubr.msk.bf16.mxu1 %vm269_vm1, %v4385_v50 }
  0x40   : > { %3713 = vmatpush3.bf16.msra.mxu0 %v1972_v52  ;;  %3684 = vmatprep.mubr.msk.bf16.mxu0 %vm269_vm1, %v4387_v51  ;;  %v4488_v52 = vpack.c.bf16 %v175_v42, %v174_v41  ;;  %v186_v41 = vld [vmem:[%s4289_s9 + $0xc0] sm:$0xff]  ;;  %v187_v42 = vld [vmem:[%s4289_s9 + $0xc8] sm:$0xff] }
  0x41   : > { %4080 = vmatprep.subr.msk.bf16.mxu0 %vm318_vm0, %v4395_v53  ;;  %v194_v53 = vld [vmem:[%s4289_s9 + $0x120] sm:$0xff] }
  0x42   : > { %v4603_v18 = vpack.c.bf16 %v195_v11, %v194_v53  ;;  %v2560_v53 = vsel %vm318_vm0, %v3331_v4, 0 }
  0x46   : > { %3531 = vmatmul.mubr.msk.bf16.gmra.mrb[20].mxu1 %vm269_vm1, %v4413_v62 }
  0x47   : > { %3685 = vmatmul.mubr.msk.bf16.gmra.mrb[4].mxu0 %vm269_vm1, %v4415_v63  ;;  %3534 = vmatprep.mubr.msk.bf16.mxu1 %vm269_vm1, %v4417_v0 }
  0x48   : > { %3688 = vmatprep.mubr.msk.bf16.mxu0 %vm269_vm1, %v4419_v2 }
  0x4e   : > { %3535 = vmatmul.mubr.msk.bf16.gmra.mrb[24].mxu1 %vm269_vm1, %v4437_v12 }
  0x4f   : > { %3689 = vmatmul.mubr.msk.bf16.gmra.mrb[8].mxu0 %vm269_vm1, %v4439_v13  ;;  %3538 = vmatprep.mubr.msk.bf16.mxu1 %vm269_vm1, %v4441_v14 }
  0x50   : > { %3692 = vmatprep.mubr.msk.bf16.mxu0 %vm269_vm1, %v4443_v16 }
  0x56   : > { %3539 = vmatmul.mubr.msk.bf16.gmra.mrb[28].mxu1 %vm269_vm1, %v4461_v29 }
  0x57   : > { %3693 = vmatmul.mubr.msk.bf16.gmra.mrb[12].mxu0 %vm269_vm1, %v4463_v30  ;;  %3544 = vmatprep.mubr.msk.bf16.mxu1 %vm269_vm1, %v202_v31  ;;  %v4545_v31 = vpack.c.bf16 %v3181_v23, %v3180_v22  ;;  %v197_v22 = vld [vmem:[%s4289_s9 + $0x140] sm:$0xff]  ;;  %v198_v23 = vld [vmem:[%s4289_s9 + $0x150] sm:$0xff] }
  0x58   : > { %3696 = vmatprep.mubr.msk.bf16.mxu0 %vm269_vm1, %v4465_v34  ;;  %v4617_v36 = vpack.c.bf16 %v197_v22, %v196_v20  ;;  %v4619_v37 = vpack.c.bf16 %v199_v35, %v198_v23 }
  0x5e   : > { %3545 = vmatmul.mubr.msk.bf16.vlgmr.msra.gmra.mrb[0].mxu1 %vm269_vm1, %v4482_v45 }
  0x5f   : > { %3577 = vmatpush3.bf16.msra.mxu1 %v794_v47  ;;  %3697 = vmatmul.mubr.msk.bf16.gmra.mrb[16].mxu0 %vm269_vm1, %v4484_v46  ;;  %v4565_v47 = vpack.c.bf16 %v187_v42, %v186_v41  ;;  %v201_v41 = vld [vmem:[%s4289_s9 + $0x170] sm:$0xff]  ;;  %v695_v42 = vld [vmem:[%s4289_s9 + $0x2] sm:$0xff] }
  0x60   : > { %3548 = vmatprep.mubr.msk.bf16.mxu1 %vm269_vm1, %v4488_v52  ;;  %3700 = vmatprep.mubr.msk.bf16.mxu0 %vm269_vm1, %v4490_v54  ;;  %v4633_v57 = vpack.c.bf16 %v201_v41, %v200_v40  ;;  %v727_v21 = vpack.c.bf16 %v696_v56, %v695_v42 }
  0x61   : > { %4075 = vmatprep.subr.msk.bf16.mxu1 %vm318_vm0, %v4497_v55  ;;  %v3230_v55 = vld [vmem:[%s4289_s9 + $0x188] sm:$0xff] }
  0x66   : > { %3549 = vmatmul.mubr.msk.bf16.gmra.mrb[4].mxu1 %vm269_vm1, %v4515_v5 }
  0x67   : > { %3701 = vmatmul.mubr.msk.bf16.gmra.mrb[20].mxu0 %vm269_vm1, %v4517_v6  ;;  %3552 = vmatprep.mubr.msk.bf16.mxu1 %vm269_vm1, %v4519_v7 }
  0x68   : > { %3704 = vmatprep.mubr.msk.bf16.mxu0 %vm269_vm1, %v4521_v8 }
  0x6e   : > { %3553 = vmatmul.mubr.msk.bf16.gmra.mrb[8].mxu1 %vm269_vm1, %v4539_v24 }
  0x6f   : > { %3705 = vmatmul.mubr.msk.bf16.gmra.mrb[24].mxu0 %vm269_vm1, %v4541_v25  ;;  %3556 = vmatprep.mubr.msk.bf16.mxu1 %vm269_vm1, %v4543_v28 }
  0x70   : > { %3708 = vmatprep.mubr.msk.bf16.mxu0 %vm269_vm1, %v4545_v31 }
  0x76   : > { %3557 = vmatmul.mubr.msk.bf16.gmra.mrb[12].mxu1 %vm269_vm1, %v4561_v43 }
  0x77   : > { %3709 = vmatmul.mubr.msk.bf16.gmra.mrb[28].mxu0 %vm269_vm1, %v4563_v44  ;;  %3560 = vmatprep.mubr.msk.bf16.mxu1 %vm269_vm1, %v4565_v47 }
  0x78   : > { %3714 = vmatprep.mubr.msk.bf16.mxu0 %vm269_vm1, %v4488_v52 }
  0x7e   : > { %3561 = vmatmul.mubr.msk.bf16.gmra.mrb[16].mxu1 %vm269_vm1, %v4579_v59 }
  0x7f   : > { %3715 = vmatmul.mubr.msk.bf16.vlgmr.msra.gmra.mrb[0].mxu0 %vm269_vm1, %v4515_v5  ;;  %3564 = vmatprep.mubr.msk.bf16.mxu1 %vm269_vm1, %v4581_v60 }
  0x80   : > { %3747 = vmatpush3.bf16.msra.mxu0 %v2266_v61  ;;  %3718 = vmatprep.mubr.msk.bf16.mxu0 %vm269_vm1, %v4519_v7 }
  0x81   : > { %4081 = vmatprep.subr.msk.bf16.mxu0 %vm318_vm0, %v3331_v4 }
  0x86   : > { %3565 = vmatmul.mubr.msk.bf16.gmra.mrb[20].mxu1 %vm269_vm1, %v4601_v17 }
  0x87   : > { %3719 = vmatmul.mubr.msk.bf16.gmra.mrb[4].mxu0 %vm269_vm1, %v4539_v24  ;;  %3568 = vmatprep.mubr.msk.bf16.mxu1 %vm269_vm1, %v4603_v18 }
  0x88   : > { %3722 = vmatprep.mubr.msk.bf16.mxu0 %vm269_vm1, %v4543_v28 }
  0x8e   : > { %3569 = vmatmul.mubr.msk.bf16.gmra.mrb[24].mxu1 %vm269_vm1, %v4617_v36 }
  0x8f   : > { %3723 = vmatmul.mubr.msk.bf16.gmra.mrb[8].mxu0 %vm269_vm1, %v4561_v43  ;;  %3572 = vmatprep.mubr.msk.bf16.mxu1 %vm269_vm1, %v4619_v37 }
  0x90   : > { %3726 = vmatprep.mubr.msk.bf16.mxu0 %vm269_vm1, %v4565_v47 }
  0x96   : > { %3573 = vmatmul.mubr.msk.bf16.gmra.mrb[28].mxu1 %vm269_vm1, %v4633_v57 }
  0x97   : > { %3727 = vmatmul.mubr.msk.bf16.gmra.mrb[12].mxu0 %vm269_vm1, %v4579_v59  ;;  %3578 = vmatprep.mubr.msk.bf16.mxu1 %vm269_vm1, %v727_v21 }
  0x98   : > { %3730 = vmatprep.mubr.msk.bf16.mxu0 %vm269_vm1, %v4581_v60 }
  0x9e   : > { %3579 = vmatmul.mubr.msk.bf16.vlgmr.msra.gmra.mrb[0].mxu1 %vm269_vm1, %v4363_v39  ;;  %v3229_v39 = vld [vmem:[%s4289_s9 + $0x180] sm:$0xff] }
  0x9f   : > { %3611 = vmatpush3.bf16.msra.mxu1 %v1089_v58  ;;  %3731 = vmatmul.mubr.msk.bf16.gmra.mrb[16].mxu0 %vm269_vm1, %v4601_v17  ;;  %v4664_v61 = vpack.c.bf16 %v3230_v55, %v3229_v39 }
  0xa0   : > { %3582 = vmatprep.mubr.msk.bf16.mxu1 %vm269_vm1, %v4383_v49  ;;  %3734 = vmatprep.mubr.msk.bf16.mxu0 %vm269_vm1, %v4603_v18 }
  0xa1   : > { %4077 = vmatprep.subr.msk.bf16.mxu1 %vm318_vm0, %v4265_v1  ;;  %v3231_v1 = vld [vmem:[%s4289_s9 + $0x198] sm:$0xff] }
  0xa2   : > { %v1920_v10 = vpack.c.bf16 %v3232_v9, %v3231_v1 }
  0xa6   : > { %3583 = vmatmul.mubr.msk.bf16.gmra.mrb[4].mxu1 %vm269_vm1, %v4387_v51 }
  0xa7   : > { %3735 = vmatmul.mubr.msk.bf16.gmra.mrb[20].mxu0 %vm269_vm1, %v4617_v36  ;;  %3586 = vmatprep.mubr.msk.bf16.mxu1 %vm269_vm1, %v4415_v63 }
  0xa8   : > { %3738 = vmatprep.mubr.msk.bf16.mxu0 %vm269_vm1, %v4619_v37 }
  0xae   : > { %3587 = vmatmul.mubr.msk.bf16.gmra.mrb[8].mxu1 %vm269_vm1, %v4419_v2 }
  0xaf   : > { %3739 = vmatmul.mubr.msk.bf16.gmra.mrb[24].mxu0 %vm269_vm1, %v4633_v57  ;;  %3590 = vmatprep.mubr.msk.bf16.mxu1 %vm269_vm1, %v4439_v13 }
  0xb0   : > { %3742 = vmatprep.mubr.msk.bf16.mxu0 %vm269_vm1, %v4664_v61 }
  0xb6   : > { %3591 = vmatmul.mubr.msk.bf16.gmra.mrb[12].mxu1 %vm269_vm1, %v4443_v16 }
  0xb7   : > { %3743 = vmatmul.mubr.msk.bf16.gmra.mrb[28].mxu0 %vm269_vm1, %v1920_v10  ;;  %3594 = vmatprep.mubr.msk.bf16.mxu1 %vm269_vm1, %v4463_v30 }
  0xb8   : > { %3748 = vmatprep.mubr.msk.bf16.mxu0 %vm269_vm1, %v4298_v15  ;;  %v3279_v15 = vld [vmem:[%s4289_s9 + $0x189] sm:$0xff] }
  0xbe   : > { %3595 = vmatmul.mubr.msk.bf16.gmra.mrb[16].mxu1 %vm269_vm1, %v4465_v34 }
  0xbf   : > { %3749 = vmatmul.mubr.msk.bf16.vlgmr.msra.gmra.mrb[0].mxu0 %vm269_vm1, %v4304_v19  ;;  %3598 = vmatprep.mubr.msk.bf16.mxu1 %vm269_vm1, %v4484_v46 }
  0xc0   : > { %3781 = vmatpush3.bf16.msra.mxu0 %v2560_v53  ;;  %3752 = vmatprep.mubr.msk.bf16.mxu0 %vm269_vm1, %v4329_v26  ;;  %v3280_v26 = vld [vmem:[%s4289_s9 + $0x199] sm:$0xff] }
  0xc6   : > { %3599 = vmatmul.mubr.msk.bf16.gmra.mrb[20].mxu1 %vm269_vm1, %v4490_v54 }
  0xc7   : > { %3753 = vmatmul.mubr.msk.bf16.gmra.mrb[4].mxu0 %vm269_vm1, %v4331_v27  ;;  %3602 = vmatprep.mubr.msk.bf16.mxu1 %vm269_vm1, %v4517_v6  ;;  %v3281_v27 = vld [vmem:[%s4289_s9 + $0x1a1] sm:$0xff] }
  0xc8   : > { %3756 = vmatprep.mubr.msk.bf16.mxu0 %vm269_vm1, %v4345_v32  ;;  %v2214_v32 = vpack.c.bf16 %v3281_v27, %v3280_v26 }
  0xce   : > { %3603 = vmatmul.mubr.msk.bf16.gmra.mrb[24].mxu1 %vm269_vm1, %v4521_v8 }
  0xcf   : > { %3757 = vmatmul.mubr.msk.bf16.gmra.mrb[8].mxu0 %vm269_vm1, %v4347_v33  ;;  %3606 = vmatprep.mubr.msk.bf16.mxu1 %vm269_vm1, %v4541_v25  ;;  %v3329_v33 = vld [vmem:[%s4289_s9 + $0x19a] sm:$0xff] }
  0xd0   : > { %3760 = vmatprep.mubr.msk.bf16.mxu0 %vm269_vm1, %v4361_v38  ;;  %v3330_v38 = vld [vmem:[%s4289_s9 + $0x1a2] sm:$0xff] }
  0xd6   : > { %3607 = vmatmul.mubr.msk.bf16.gmra.mrb[28].mxu1 %vm269_vm1, %v4545_v31 }
  0xd7   : > { %3761 = vmatmul.mubr.msk.bf16.gmra.mrb[12].mxu0 %vm269_vm1, %v4381_v48  ;;  %3612 = vmatprep.mubr.msk.bf16.mxu1 %vm269_vm1, %v4482_v45 }
  0xd8   : > { %3764 = vmatprep.mubr.msk.bf16.mxu0 %vm269_vm1, %v4385_v50 }
  0xde   : > { %3613 = vmatmul.mubr.msk.bf16.vlgmr.msra.gmra.mrb[0].mxu1 %vm269_vm1, %v4488_v52 }
  0xdf   : > { %3815 = vmatpush3.bf16.msra.mxu1 %v4274_v3  ;;  %3765 = vmatmul.mubr.msk.bf16.gmra.mrb[16].mxu0 %vm269_vm1, %v4413_v62  ;;  %v3278_v3 = vld [vmem:[%s4289_s9 + $0x181] sm:$0xff] }
  0xe0   : > { %3616 = vmatprep.mubr.msk.bf16.mxu1 %vm269_vm1, %v4515_v5  ;;  %3768 = vmatprep.mubr.msk.bf16.mxu0 %vm269_vm1, %v4417_v0  ;;  %v2213_v19 = vpack.c.bf16 %v3279_v15, %v3278_v3 }
  0xe6   : > { %3617 = vmatmul.mubr.msk.bf16.gmra.mrb[4].mxu1 %vm269_vm1, %v4519_v7 }
  0xe7   : > { %3769 = vmatmul.mubr.msk.bf16.gmra.mrb[20].mxu0 %vm269_vm1, %v4437_v12  ;;  %3620 = vmatprep.mubr.msk.bf16.mxu1 %vm269_vm1, %v4539_v24 }
  0xe8   : > { %3772 = vmatprep.mubr.msk.bf16.mxu0 %vm269_vm1, %v4441_v14 }
  0xee   : > { %3621 = vmatmul.mubr.msk.bf16.gmra.mrb[8].mxu1 %vm269_vm1, %v4543_v28 }
  0xef   : > { %3773 = vmatmul.mubr.msk.bf16.gmra.mrb[24].mxu0 %vm269_vm1, %v4461_v29  ;;  %3624 = vmatprep.mubr.msk.bf16.mxu1 %vm269_vm1, %v4561_v43 }
  0xf0   : > { %3776 = vmatprep.mubr.msk.bf16.mxu0 %vm269_vm1, %v2213_v19 }
  0xf6   : > { %3625 = vmatmul.mubr.msk.bf16.gmra.mrb[12].mxu1 %vm269_vm1, %v4565_v47 }
  0xf7   : > { %3777 = vmatmul.mubr.msk.bf16.gmra.mrb[28].mxu0 %vm269_vm1, %v2214_v32  ;;  %3628 = vmatprep.mubr.msk.bf16.mxu1 %vm269_vm1, %v4579_v59 }
  0xf8   : > { %3782 = vmatprep.mubr.msk.bf16.mxu0 %vm269_vm1, %v4383_v49 }
  0xfe   : > { %3629 = vmatmul.mubr.msk.bf16.gmra.mrb[16].mxu1 %vm269_vm1, %v4581_v60 }
  0xff   : > { %3783 = vmatmul.mubr.msk.bf16.vlgmr.msra.gmra.mrb[0].mxu0 %vm269_vm1, %v4387_v51  ;;  %3632 = vmatprep.mubr.msk.bf16.mxu1 %vm269_vm1, %v4601_v17 }
 0x100   : > { %3786 = vmatprep.mubr.msk.bf16.mxu0 %vm269_vm1, %v4415_v63 }
 0x106   : > { %3633 = vmatmul.mubr.msk.bf16.gmra.mrb[20].mxu1 %vm269_vm1, %v4603_v18 }
 0x107   : > { %3787 = vmatmul.mubr.msk.bf16.gmra.mrb[4].mxu0 %vm269_vm1, %v4419_v2  ;;  %3636 = vmatprep.mubr.msk.bf16.mxu1 %vm269_vm1, %v4617_v36 }
 0x108   : > { %3790 = vmatprep.mubr.msk.bf16.mxu0 %vm269_vm1, %v4439_v13 }
 0x10e   : > { %3637 = vmatmul.mubr.msk.bf16.gmra.mrb[24].mxu1 %vm269_vm1, %v4619_v37 }
 0x10f   : > { %3791 = vmatmul.mubr.msk.bf16.gmra.mrb[8].mxu0 %vm269_vm1, %v4443_v16  ;;  %3640 = vmatprep.mubr.msk.bf16.mxu1 %vm269_vm1, %v4633_v57 }
 0x110   : > { %3794 = vmatprep.mubr.msk.bf16.mxu0 %vm269_vm1, %v4463_v30 }
 0x116   : > { %3641 = vmatmul.mubr.msk.bf16.gmra.mrb[28].mxu1 %vm269_vm1, %v4664_v61 }
 0x117   : > { %3795 = vmatmul.mubr.msk.bf16.gmra.mrb[12].mxu0 %vm269_vm1, %v4465_v34  ;;  %3662 = vmatprep.mubr.msk.bf16.mxu1 %vm269_vm1, %v4381_v48  ;;  %v2508_v48 = vpack.c.bf16 %v3330_v38, %v3329_v33 }
 0x118   : > { %3798 = vmatprep.mubr.msk.bf16.mxu0 %vm269_vm1, %v4484_v46 }
 0x11e   : > { %3663 = vmatmul.mubr.msk.bf16.vlgmr.msra.gmra.mrb[16].mxu1 %vm269_vm1, %v4385_v50 }
 0x11f   : > { %3799 = vmatmul.mubr.msk.bf16.gmra.mrb[16].mxu0 %vm269_vm1, %v4490_v54  ;;  %3666 = vmatprep.mubr.msk.bf16.mxu1 %vm269_vm1, %v4413_v62  ;;  %v4831_v54 = vld [vmem:[%s4963_s2] ss:$0 sm:$0xff] }
 0x120   : > { %3802 = vmatprep.mubr.msk.bf16.mxu0 %vm269_vm1, %v4517_v6 }
 0x126   : > { %3667 = vmatmul.mubr.msk.bf16.gmra.mrb[20].mxu1 %vm269_vm1, %v4417_v0 }
 0x127   : > { %3803 = vmatmul.mubr.msk.bf16.gmra.mrb[20].mxu0 %vm269_vm1, %v4521_v8  ;;  %3670 = vmatprep.mubr.msk.bf16.mxu1 %vm269_vm1, %v4437_v12 }
 0x128   : > { %3806 = vmatprep.mubr.msk.bf16.mxu0 %vm269_vm1, %v4541_v25 }
 0x12e   : > { %3671 = vmatmul.mubr.msk.bf16.gmra.mrb[24].mxu1 %vm269_vm1, %v4441_v14 }
 0x12f   : > { %3807 = vmatmul.mubr.msk.bf16.gmra.mrb[24].mxu0 %vm269_vm1, %v4545_v31  ;;  %3674 = vmatprep.mubr.msk.bf16.mxu1 %vm269_vm1, %v4461_v29 }
 0x130   : > { %3810 = vmatprep.mubr.msk.bf16.mxu0 %vm269_vm1, %v4563_v44 }
 0x136   : > { %3675 = vmatmul.mubr.msk.bf16.gmra.mrb[28].mxu1 %vm269_vm1, %v2213_v19 }
 0x137   : > { %3811 = vmatmul.mubr.msk.bf16.gmra.mrb[28].mxu0 %vm269_vm1, %v2508_v48 }
 0x1b1   : > { %v3614_v49 = vpop.f32.mrb[0].mxu1 }
 0x1b2   : > { %v1125_v50 = vpop.f32.mrb[1].mxu1 }
 0x1b3   : > { %v3615_v51 = vpop.f32.mrb[2].mxu1 }
 0x1b4   : > { %v1128_v62 = vpop.f32.mrb[3].mxu1 }
 0x1b9   : > { %v3618_v63 = vpop.f32.mrb[4].mxu1 }
 0x1ba   : > { %v1141_v0 = vpop.f32.mrb[5].mxu1 }
 0x1bb   : > { %v3619_v2 = vpop.f32.mrb[6].mxu1 }
 0x1bc   : > { %v1144_v12 = vpop.f32.mrb[7].mxu1 }
 0x1c1   : > { %v4811_v13 = vpop.f32.mrb[8].mxu1 }
 0x1c2   : > { %v4813_v14 = vpop.f32.mrb[9].mxu1 }
 0x1c3   : > { %v4815_v16 = vpop.f32.mrb[10].mxu1 }
 0x1c4   : > { %v4817_v29 = vpop.f32.mrb[11].mxu1 }
 0x1c9   : > { %v4819_v30 = vpop.f32.mrb[12].mxu1 }
 0x1ca   : > { %v4821_v34 = vpop.f32.mrb[13].mxu1 }
 0x1cb   : > { %v4823_v45 = vpop.f32.mrb[14].mxu1 }
 0x1cc   : > { %v4825_v46 = vpop.f32.mrb[15].mxu1 }
 0x1d2   : > { %v3784_v52 = vpop.f32.mrb[0].mxu0 }
 0x1d3   : > { %v3816_v5 = vadd.f32 %v3784_v52, %v3614_v49  ;;  %v2596_v6 = vpop.f32.mrb[1].mxu0 }
 0x1d4   : > { %v3817_v7 = vadd.f32 %v2596_v6, %v1125_v50  ;;  %v3785_v8 = vpop.f32.mrb[2].mxu0 }
 0x1d5   : > { %v2764_v24 = vadd.f32 %v3816_v5, %v4831_v54  ;;  %v3818_v25 = vadd.f32 %v3785_v8, %v3615_v51  ;;  %v2599_v28 = vpop.f32.mrb[3].mxu0 }
 0x1d6   : > { %v2762_v31 = vadd.f32 %v3817_v7, %v4831_v54  ;;  %v3819_v43 = vadd.f32 %v2599_v28, %v1128_v62 }
 0x1d7   : > { %vm2796_vm2 = vcmp.ge.f32.partialorder %v2764_v24, 0.0  ;;  %v2828_v44 = vmul.f32 0.2, %v2764_v24  ;;  %v2765_v47 = vadd.f32 %v3818_v25, %v4831_v54 }
 0x1d8   : > { %vm2794_vm3 = vcmp.ge.f32.partialorder %v2762_v31, 0.0  ;;  %v2826_v59 = vmul.f32 0.2, %v2762_v31  ;;  %v2763_v60 = vadd.f32 %v3819_v43, %v4831_v54 }
 0x1d9   : > { %v2860_v4 = vsel %vm2796_vm2, %v2764_v24, %v2828_v44  ;;  %vm2797_vm4 = vcmp.ge.f32.partialorder %v2765_v47, 0.0  ;;  %v2829_v11 = vmul.f32 0.2, %v2765_v47 }
 0x1da   : > { %2892 = vst [vmem:[%s4839_s6 + $0x10] sm:$0xff] %v2860_v4  ;;  %v2858_v17 = vsel %vm2794_vm3, %v2762_v31, %v2826_v59  ;;  %vm2795_vm5 = vcmp.ge.f32.partialorder %v2763_v60, 0.0  ;;  %v2827_v18 = vmul.f32 0.2, %v2763_v60  ;;  %v3788_v20 = vpop.f32.mrb[4].mxu0 }
 0x1db   : > { %2890 = vst [vmem:[%s4839_s6] sm:$0xff] %v2858_v17  ;;  %v2861_v22 = vsel %vm2797_vm4, %v2765_v47, %v2829_v11  ;;  %v3820_v23 = vadd.f32 %v3788_v20, %v3618_v63  ;;  %v2612_v35 = vpop.f32.mrb[5].mxu0 }
 0x1dc   : > { %2893 = vst [vmem:[%s4839_s6 + $0x18] sm:$0xff] %v2861_v22  ;;  %v2859_v36 = vsel %vm2795_vm5, %v2763_v60, %v2827_v18  ;;  %v3821_v37 = vadd.f32 %v2612_v35, %v1141_v0  ;;  %v3789_v40 = vpop.f32.mrb[6].mxu0 }
 0x1dd   : > { %2891 = vst [vmem:[%s4839_s6 + $0x8] sm:$0xff] %v2859_v36  ;;  %v2768_v41 = vadd.f32 %v3820_v23, %v4831_v54  ;;  %v3822_v42 = vadd.f32 %v3789_v40, %v3619_v2  ;;  %v2615_v56 = vpop.f32.mrb[7].mxu0 }
 0x1de   : > { %v2766_v57 = vadd.f32 %v3821_v37, %v4831_v54  ;;  %v3823_v21 = vadd.f32 %v2615_v56, %v1144_v12 }
 0x1df   : > { %vm2800_vm6 = vcmp.ge.f32.partialorder %v2768_v41, 0.0  ;;  %v2832_v58 = vmul.f32 0.2, %v2768_v41  ;;  %v2769_v39 = vadd.f32 %v3822_v42, %v4831_v54 }
 0x1e0   : > { %vm2798_vm7 = vcmp.ge.f32.partialorder %v2766_v57, 0.0  ;;  %v2830_v55 = vmul.f32 0.2, %v2766_v57  ;;  %v2767_v61 = vadd.f32 %v3823_v21, %v4831_v54 }
 0x1e1   : > { %v2864_v1 = vsel %vm2800_vm6, %v2768_v41, %v2832_v58  ;;  %vm2801_vm8 = vcmp.ge.f32.partialorder %v2769_v39, 0.0  ;;  %v2833_v9 = vmul.f32 0.2, %v2769_v39 }
 0x1e2   : > { %2896 = vst [vmem:[%s4839_s6 + $0x30] sm:$0xff] %v2864_v1  ;;  %v2862_v10 = vsel %vm2798_vm7, %v2766_v57, %v2830_v55  ;;  %vm2799_vm9 = vcmp.ge.f32.partialorder %v2767_v61, 0.0  ;;  %v2831_v53 = vmul.f32 0.2, %v2767_v61  ;;  %v3792_v3 = vpop.f32.mrb[8].mxu0 }
 0x1e3   : > { %2894 = vst [vmem:[%s4839_s6 + $0x20] sm:$0xff] %v2862_v10  ;;  %v2865_v15 = vsel %vm2801_vm8, %v2769_v39, %v2833_v9  ;;  %v3824_v19 = vadd.f32 %v3792_v3, %v4811_v13  ;;  %v2628_v26 = vpop.f32.mrb[9].mxu0 }
 0x1e4   : > { %2897 = vst [vmem:[%s4839_s6 + $0x38] sm:$0xff] %v2865_v15  ;;  %v2863_v27 = vsel %vm2799_vm9, %v2767_v61, %v2831_v53  ;;  %v3825_v32 = vadd.f32 %v2628_v26, %v4813_v14  ;;  %v3793_v33 = vpop.f32.mrb[10].mxu0 }
 0x1e5   : > { %2895 = vst [vmem:[%s4839_s6 + $0x28] sm:$0xff] %v2863_v27  ;;  %v2772_v38 = vadd.f32 %v3824_v19, %v4831_v54  ;;  %v3826_v48 = vadd.f32 %v3793_v33, %v4815_v16  ;;  %v2631_v49 = vpop.f32.mrb[11].mxu0 }
 0x1e6   : > { %v2770_v50 = vadd.f32 %v3825_v32, %v4831_v54  ;;  %v3827_v51 = vadd.f32 %v2631_v49, %v4817_v29 }
 0x1e7   : > { %vm2804_vm10 = vcmp.ge.f32.partialorder %v2772_v38, 0.0  ;;  %v2836_v62 = vmul.f32 0.2, %v2772_v38  ;;  %v2773_v63 = vadd.f32 %v3826_v48, %v4831_v54 }
 0x1e8   : > { %vm2802_vm11 = vcmp.ge.f32.partialorder %v2770_v50, 0.0  ;;  %v2834_v0 = vmul.f32 0.2, %v2770_v50  ;;  %v2771_v2 = vadd.f32 %v3827_v51, %v4831_v54 }
 0x1e9   : > { %v2868_v12 = vsel %vm2804_vm10, %v2772_v38, %v2836_v62  ;;  %vm2805_vm12 = vcmp.ge.f32.partialorder %v2773_v63, 0.0  ;;  %v2837_v13 = vmul.f32 0.2, %v2773_v63 }
 0x1ea   : > { %2900 = vst [vmem:[%s4839_s6 + $0x50] sm:$0xff] %v2868_v12  ;;  %v2866_v14 = vsel %vm2802_vm11, %v2770_v50, %v2834_v0  ;;  %vm2803_vm13 = vcmp.ge.f32.partialorder %v2771_v2, 0.0  ;;  %v2835_v16 = vmul.f32 0.2, %v2771_v2  ;;  %v3796_v52 = vpop.f32.mrb[12].mxu0 }
 0x1eb   : > { %2898 = vst [vmem:[%s4839_s6 + $0x40] sm:$0xff] %v2866_v14  ;;  %v2869_v29 = vsel %vm2805_vm12, %v2773_v63, %v2837_v13  ;;  %v3828_v5 = vadd.f32 %v3796_v52, %v4819_v30  ;;  %v2644_v6 = vpop.f32.mrb[13].mxu0 }
 0x1ec   : > { %2901 = vst [vmem:[%s4839_s6 + $0x58] sm:$0xff] %v2869_v29  ;;  %v2867_v7 = vsel %vm2803_vm13, %v2771_v2, %v2835_v16  ;;  %v3829_v8 = vadd.f32 %v2644_v6, %v4821_v34  ;;  %v3797_v24 = vpop.f32.mrb[14].mxu0 }
 0x1ed   : > { %2899 = vst [vmem:[%s4839_s6 + $0x48] sm:$0xff] %v2867_v7  ;;  %v2776_v25 = vadd.f32 %v3828_v5, %v4831_v54  ;;  %v3830_v28 = vadd.f32 %v3797_v24, %v4823_v45  ;;  %v2647_v31 = vpop.f32.mrb[15].mxu0 }
 0x1ee   : > { %v2774_v43 = vadd.f32 %v3829_v8, %v4831_v54  ;;  %v3831_v44 = vadd.f32 %v2647_v31, %v4825_v46 }
 0x1ef   : > { %vm2808_vm14 = vcmp.ge.f32.partialorder %v2776_v25, 0.0  ;;  %v2840_v30 = vmul.f32 0.2, %v2776_v25  ;;  %v2777_v47 = vadd.f32 %v3830_v28, %v4831_v54 }
 0x1f0   : > { %vm2806_vm15 = vcmp.ge.f32.partialorder %v2774_v43, 0.0  ;;  %v2838_v59 = vmul.f32 0.2, %v2774_v43  ;;  %v2775_v34 = vadd.f32 %v3831_v44, %v4831_v54 }
 0x1f1   : > { %v2872_v60 = vsel %vm2808_vm14, %v2776_v25, %v2840_v30  ;;  %vm2809_vm0 = vcmp.ge.f32.partialorder %v2777_v47, 0.0  ;;  %v2841_v4 = vmul.f32 0.2, %v2777_v47  ;;  %v3664_v11 = vpop.f32.mrb[16].mxu1 }
 0x1f2   : > { %2904 = vst [vmem:[%s4839_s6 + $0x70] sm:$0xff] %v2872_v60  ;;  %v2870_v45 = vsel %vm2806_vm15, %v2774_v43, %v2838_v59  ;;  %vm2807_vm1 = vcmp.ge.f32.partialorder %v2775_v34, 0.0  ;;  %v2839_v17 = vmul.f32 0.2, %v2775_v34  ;;  %v3800_v46 = vpop.f32.mrb[16].mxu0  ;;  %v1483_v18 = vpop.f32.mrb[17].mxu1 }
 0x1f3   : > { %2902 = vst [vmem:[%s4839_s6 + $0x60] sm:$0xff] %v2870_v45  ;;  %v2873_v20 = vsel %vm2809_vm0, %v2777_v47, %v2841_v4  ;;  %v3832_v22 = vadd.f32 %v3800_v46, %v3664_v11  ;;  %v2660_v23 = vpop.f32.mrb[17].mxu0  ;;  %v3665_v35 = vpop.f32.mrb[18].mxu1 }
 0x1f4   : > { %2905 = vst [vmem:[%s4839_s6 + $0x78] sm:$0xff] %v2873_v20  ;;  %v2871_v36 = vsel %vm2807_vm1, %v2775_v34, %v2839_v17  ;;  %v3833_v37 = vadd.f32 %v2660_v23, %v1483_v18  ;;  %v3801_v40 = vpop.f32.mrb[18].mxu0  ;;  %v1486_v41 = vpop.f32.mrb[19].mxu1 }
 0x1f5   : > { %2903 = vst [vmem:[%s4839_s6 + $0x68] sm:$0xff] %v2871_v36  ;;  %v2780_v42 = vadd.f32 %v3832_v22, %v4831_v54  ;;  %v3834_v56 = vadd.f32 %v3801_v40, %v3665_v35  ;;  %v2663_v57 = vpop.f32.mrb[19].mxu0 }
 0x1f6   : > { %v2778_v21 = vadd.f32 %v3833_v37, %v4831_v54  ;;  %v3835_v58 = vadd.f32 %v2663_v57, %v1486_v41 }
 0x1f7   : > { %vm2812_vm2 = vcmp.ge.f32.partialorder %v2780_v42, 0.0  ;;  %v2844_v39 = vmul.f32 0.2, %v2780_v42  ;;  %v2781_v55 = vadd.f32 %v3834_v56, %v4831_v54 }
 0x1f8   : > { %vm2810_vm3 = vcmp.ge.f32.partialorder %v2778_v21, 0.0  ;;  %v2842_v61 = vmul.f32 0.2, %v2778_v21  ;;  %v2779_v1 = vadd.f32 %v3835_v58, %v4831_v54 }
 0x1f9   : > { %v2876_v9 = vsel %vm2812_vm2, %v2780_v42, %v2844_v39  ;;  %vm2813_vm4 = vcmp.ge.f32.partialorder %v2781_v55, 0.0  ;;  %v2845_v10 = vmul.f32 0.2, %v2781_v55  ;;  %v3668_v53 = vpop.f32.mrb[20].mxu1 }
 0x1fa   : > { %2908 = vst [vmem:[%s4839_s6 + $0x90] sm:$0xff] %v2876_v9  ;;  %v2874_v3 = vsel %vm2810_vm3, %v2778_v21, %v2842_v61  ;;  %vm2811_vm5 = vcmp.ge.f32.partialorder %v2779_v1, 0.0  ;;  %v2843_v15 = vmul.f32 0.2, %v2779_v1  ;;  %v3804_v19 = vpop.f32.mrb[20].mxu0  ;;  %v1499_v26 = vpop.f32.mrb[21].mxu1 }
 0x1fb   : > { %2906 = vst [vmem:[%s4839_s6 + $0x80] sm:$0xff] %v2874_v3  ;;  %v2877_v27 = vsel %vm2813_vm4, %v2781_v55, %v2845_v10  ;;  %v3836_v32 = vadd.f32 %v3804_v19, %v3668_v53  ;;  %v2676_v33 = vpop.f32.mrb[21].mxu0  ;;  %v3669_v38 = vpop.f32.mrb[22].mxu1 }
 0x1fc   : > { %2909 = vst [vmem:[%s4839_s6 + $0x98] sm:$0xff] %v2877_v27  ;;  %v2875_v48 = vsel %vm2811_vm5, %v2779_v1, %v2843_v15  ;;  %v3837_v49 = vadd.f32 %v2676_v33, %v1499_v26  ;;  %v3805_v50 = vpop.f32.mrb[22].mxu0  ;;  %v1502_v51 = vpop.f32.mrb[23].mxu1 }
 0x1fd   : > { %2907 = vst [vmem:[%s4839_s6 + $0x88] sm:$0xff] %v2875_v48  ;;  %v2784_v62 = vadd.f32 %v3836_v32, %v4831_v54  ;;  %v3838_v63 = vadd.f32 %v3805_v50, %v3669_v38  ;;  %v2679_v0 = vpop.f32.mrb[23].mxu0 }
 0x1fe   : > { %v2782_v2 = vadd.f32 %v3837_v49, %v4831_v54  ;;  %v3839_v12 = vadd.f32 %v2679_v0, %v1502_v51 }
 0x1ff   : > { %vm2816_vm6 = vcmp.ge.f32.partialorder %v2784_v62, 0.0  ;;  %v2848_v13 = vmul.f32 0.2, %v2784_v62  ;;  %v2785_v14 = vadd.f32 %v3838_v63, %v4831_v54 }
 0x200   : > { %vm2814_vm7 = vcmp.ge.f32.partialorder %v2782_v2, 0.0  ;;  %v2846_v16 = vmul.f32 0.2, %v2782_v2  ;;  %v2783_v52 = vadd.f32 %v3839_v12, %v4831_v54 }
 0x201   : > { %v2880_v29 = vsel %vm2816_vm6, %v2784_v62, %v2848_v13  ;;  %vm2817_vm8 = vcmp.ge.f32.partialorder %v2785_v14, 0.0  ;;  %v2849_v5 = vmul.f32 0.2, %v2785_v14  ;;  %v3672_v6 = vpop.f32.mrb[24].mxu1 }
 0x202   : > { %2912 = vst [vmem:[%s4839_s6 + $0xb0] sm:$0xff] %v2880_v29  ;;  %v2878_v7 = vsel %vm2814_vm7, %v2782_v2, %v2846_v16  ;;  %vm2815_vm9 = vcmp.ge.f32.partialorder %v2783_v52, 0.0  ;;  %v2847_v8 = vmul.f32 0.2, %v2783_v52  ;;  %v3808_v24 = vpop.f32.mrb[24].mxu0  ;;  %v1515_v25 = vpop.f32.mrb[25].mxu1 }
 0x203   : > { %2910 = vst [vmem:[%s4839_s6 + $0xa0] sm:$0xff] %v2878_v7  ;;  %v2881_v28 = vsel %vm2817_vm8, %v2785_v14, %v2849_v5  ;;  %v3840_v31 = vadd.f32 %v3808_v24, %v3672_v6  ;;  %v2692_v43 = vpop.f32.mrb[25].mxu0  ;;  %v3673_v44 = vpop.f32.mrb[26].mxu1 }
 0x204   : > { %2913 = vst [vmem:[%s4839_s6 + $0xb8] sm:$0xff] %v2881_v28  ;;  %v2879_v30 = vsel %vm2815_vm9, %v2783_v52, %v2847_v8  ;;  %v3841_v47 = vadd.f32 %v2692_v43, %v1515_v25  ;;  %v3809_v59 = vpop.f32.mrb[26].mxu0  ;;  %v1518_v34 = vpop.f32.mrb[27].mxu1 }
 0x205   : > { %2911 = vst [vmem:[%s4839_s6 + $0xa8] sm:$0xff] %v2879_v30  ;;  %v2788_v60 = vadd.f32 %v3840_v31, %v4831_v54  ;;  %v3842_v4 = vadd.f32 %v3809_v59, %v3673_v44  ;;  %v2695_v11 = vpop.f32.mrb[27].mxu0 }
 0x206   : > { %v2786_v45 = vadd.f32 %v3841_v47, %v4831_v54  ;;  %v3843_v17 = vadd.f32 %v2695_v11, %v1518_v34 }
 0x207   : > { %vm2820_vm10 = vcmp.ge.f32.partialorder %v2788_v60, 0.0  ;;  %v2852_v46 = vmul.f32 0.2, %v2788_v60  ;;  %v2789_v18 = vadd.f32 %v3842_v4, %v4831_v54 }
 0x208   : > { %vm2818_vm11 = vcmp.ge.f32.partialorder %v2786_v45, 0.0  ;;  %v2850_v20 = vmul.f32 0.2, %v2786_v45  ;;  %v2787_v22 = vadd.f32 %v3843_v17, %v4831_v54 }
 0x209   : > { %v2884_v23 = vsel %vm2820_vm10, %v2788_v60, %v2852_v46  ;;  %vm2821_vm12 = vcmp.ge.f32.partialorder %v2789_v18, 0.0  ;;  %v2853_v35 = vmul.f32 0.2, %v2789_v18  ;;  %v3676_v36 = vpop.f32.mrb[28].mxu1 }
 0x20a   : > { %2916 = vst [vmem:[%s4839_s6 + $0xd0] sm:$0xff] %v2884_v23  ;;  %v2882_v37 = vsel %vm2818_vm11, %v2786_v45, %v2850_v20  ;;  %vm2819_vm13 = vcmp.ge.f32.partialorder %v2787_v22, 0.0  ;;  %v2851_v40 = vmul.f32 0.2, %v2787_v22  ;;  %v3812_v41 = vpop.f32.mrb[28].mxu0  ;;  %v1531_v42 = vpop.f32.mrb[29].mxu1 }
 0x20b   : > { %2914 = vst [vmem:[%s4839_s6 + $0xc0] sm:$0xff] %v2882_v37  ;;  %v2885_v56 = vsel %vm2821_vm12, %v2789_v18, %v2853_v35  ;;  %v3844_v57 = vadd.f32 %v3812_v41, %v3676_v36  ;;  %v2708_v21 = vpop.f32.mrb[29].mxu0  ;;  %v3677_v58 = vpop.f32.mrb[30].mxu1 }
 0x20c   : > { %2917 = vst [vmem:[%s4839_s6 + $0xd8] sm:$0xff] %v2885_v56  ;;  %v2883_v39 = vsel %vm2819_vm13, %v2787_v22, %v2851_v40  ;;  %v3845_v55 = vadd.f32 %v2708_v21, %v1531_v42  ;;  %v3813_v61 = vpop.f32.mrb[30].mxu0  ;;  %v1534_v1 = vpop.f32.mrb[31].mxu1 }
 0x20d   : > { %2915 = vst [vmem:[%s4839_s6 + $0xc8] sm:$0xff] %v2883_v39  ;;  %v2792_v9 = vadd.f32 %v3844_v57, %v4831_v54  ;;  %v3846_v10 = vadd.f32 %v3813_v61, %v3677_v58  ;;  %v2711_v53 = vpop.f32.mrb[31].mxu0 }
 0x20e   : > { %v2790_v3 = vadd.f32 %v3845_v55, %v4831_v54  ;;  %v3847_v15 = vadd.f32 %v2711_v53, %v1534_v1 }
 0x20f   : > { %vm2824_vm14 = vcmp.ge.f32.partialorder %v2792_v9, 0.0  ;;  %v2856_v19 = vmul.f32 0.2, %v2792_v9  ;;  %v2793_v26 = vadd.f32 %v3846_v10, %v4831_v54 }
 0x210   : > { %vm2822_vm15 = vcmp.ge.f32.partialorder %v2790_v3, 0.0  ;;  %v2854_v27 = vmul.f32 0.2, %v2790_v3  ;;  %v2791_v32 = vadd.f32 %v3847_v15, %v4831_v54 }
 0x211   : > { %v2888_v33 = vsel %vm2824_vm14, %v2792_v9, %v2856_v19  ;;  %vm2825_vm0 = vcmp.ge.f32.partialorder %v2793_v26, 0.0  ;;  %v2857_v38 = vmul.f32 0.2, %v2793_v26 }
 0x212   : > { %2920 = vst [vmem:[%s4839_s6 + $0xf0] sm:$0xff] %v2888_v33  ;;  %v2886_v48 = vsel %vm2822_vm15, %v2790_v3, %v2854_v27  ;;  %vm2823_vm1 = vcmp.ge.f32.partialorder %v2791_v32, 0.0  ;;  %v2855_v49 = vmul.f32 0.2, %v2791_v32 }
 0x213   : > { %2918 = vst [vmem:[%s4839_s6 + $0xe0] sm:$0xff] %v2886_v48  ;;  %v2889_v54 = vsel %vm2825_vm0, %v2793_v26, %v2857_v38 }
 0x214   : > { %2921 = vst [vmem:[%s4839_s6 + $0xf8] sm:$0xff] %v2889_v54  ;;  %v2887_v50 = vsel %vm2823_vm1, %v2791_v32, %v2855_v49 }
 0x215   : > { %2919 = vst [vmem:[%s4839_s6 + $0xe8] sm:$0xff] %v2887_v50 }
 0x216   : > { %4137 = shalt.err (!%p4134_p3)
}
 0x217   : > { %s4138_s25 = scalar_lea.hbm %s4911_s16, 4096  ;;  %s4142_s28 = scalar_lea.hbm %s4964_s3, 8192 }
 0x218   : > { %p4139_p4 = scmp.ne.s32.totalorder %s4911_s16, %s4138_s25  ;;  %p4143_p9 = scmp.lt.u32.totalorder %s4911_s16, %s4964_s3 }
 0x219   : > { %p4144_p10 = scmp.lt.u32.totalorder %s4142_s28, %s4138_s25  ;;  %p4146_p12 = scmp.lt.u32.totalorder %s4138_s25, %s4911_s16 }
 0x21a   : > { %p4140_p7 = pnand %p4139_p4, %p4249_p5 }
 0x21b   : > { %p4145_p11 = por %p4144_p10, %p4143_p9 }
 0x21c   : > { %p4141_p8 = pneg %p4140_p7 }
 0x21d   : > { %p4147_p13 = por %p4146_p12, %p4145_p11 }
 0x21f   : > { %p4148_p0 = pnand %p4147_p13, %p4141_p8 }
 0x221   : > { %4151 = shalt.err (!%p4148_p0)
}
 0x222   : > { %s4189_s4 = smov 128   ;;  %s4190_s5 = smov 8  }
 0x223   : > { %4083 = dma.vmem_to_hbm [thread:$0]  (%p4249_p5), %s4913_s8, 4096, %s4911_s16, %s4920_s11, %s4189_s4, %s4189_s4, %s4190_s5  }
 0x224 PF: > { %p4089_p1 = scmp.ge.s32.totalorder %s4186_s15, 2  ;;  %s2951_s6 = sand.u32 1, %s4174_s12  }
 0x225   : > { %s2952_s7 = scalar_lea.sflag [#allocation3], %s2951_s6 }
 0x226   : > { %p4086_p2 = pnand %p4089_p1, %p4253_p6 }
 0x228   : > { %4169 = dma.done.wait (!%p4086_p2), %s2952_s7, 4096  }
 0x229   : > { %4171 = vsyncadd (!%p4086_p2), %s2952_s7, 4294963200  ;;  %p13_p3 = scmp.ge.s32.totalorder %s4236_s18, 4   ;;  %s4967_s12 = smov %s4178_s13 }
 0x22a   : > { %s4968_s13 = smov %s4182_s14  ;;  %s4969_s14 = smov %s4247_s21 }
 0x22b   : > { %s4970_s15 = smov %s4236_s18  ;;  %15 = sbr.rel (!%p13_p3) target bundleno = 3 (0x3), region = 77 }
 0x232   :  { %2957 = vsyncpa [#allocation3], 1 }
 0x233   :  { %2959 = vsyncpa [#allocation3 + $0x1], 1 }

</bundles_post_ra>
